<compile_context>
chip_gen: v7x
topology: tpu7x:2x2x1
jax: 0.10.0
libtpu: 0.0.40
codegen_flags: <defaults>
</compile_context>

<pallas_src>
import functools

import jax
import jax.numpy as jnp
import numpy as np
from jax.experimental import pallas as pl


# ----------------------------- config (small, synthetic) -----------------------------
BATCH = 2
SEQ = 8
HIDDEN = 32
NUM_HEADS = 4
HEAD_DIM = HIDDEN // NUM_HEADS
INTERMEDIATE = 64
NUM_LAYERS = 2
LN_EPS = 1e-5
SCALE = HEAD_DIM ** (-0.5)

D_PAD = 128   # lane-dense padded hidden width (multiple of 128)
I_PAD = 128   # lane-dense padded MLP width

_PARAM_NAMES = ("ln1_g", "ln1_b", "wq", "bq", "wk", "bk", "wv", "bv",
                "wo", "bo", "ln2_g", "ln2_b", "w1", "b1", "w2", "b2")
_MASK_NAMES = ("ch_mask", "blk", "bsum", "amask")


# ----------------------------- fused Pallas kernel ------------------------------------
def _encoder_stack_kernel(
    x_ref,                      # (R, D_PAD) f32   batch-folded, zero-padded embeddings
    ch_ref,                     # (R, D_PAD) f32   1.0 on real channels, 0.0 on pad lanes
    blk_ref,                    # (H*R, D_PAD) f32 head<->channel block mask (K/V expansion)
    bsum_ref,                   # (H*R, H*R) f32   per-(head,batch) block-sum matrix
    amask_ref,                  # (R, H*R) f32     additive batch mask (0 valid / -1e9 cross)
    ln1_g, ln1_b,               # (L, 1, D_PAD) f32 (padded gamma/beta are ZERO)
    wq, bq,                     # (L, D_PAD, D_PAD) bf16 / (L, 1, D_PAD) f32 (scale folded in)
    wk, bk,
    wv, bv,
    wo, bo,
    ln2_g, ln2_b,
    w1, b1,                     # (L, D_PAD, I_PAD) bf16 / (L, 1, I_PAD) f32
    w2, b2,                     # (L, I_PAD, D_PAD) bf16 / (L, 1, D_PAD) f32
    out_ref,                    # (R, D_PAD) f32
    *, num_layers, d_model, num_heads, eps,
):
    # Hoisted constants — loaded once, reused by every layer (no in-kernel iota/compare).
    ch_mask = ch_ref[...]
    blk = blk_ref[...]
    bsum = bsum_ref[...]
    amask = amask_ref[...]
    inv_d = 1.0 / d_model

    def layer_norm(h, g, b):
        # Padded lanes of h are exactly 0; ch_mask keeps them out of the statistics.
        mu = jnp.sum(h, axis=-1, keepdims=True) * inv_d
        hc = (h - mu) * ch_mask
        var = jnp.sum(hc * hc, axis=-1, keepdims=True) * inv_d
        return hc * jax.lax.rsqrt(var + eps) * g + b    # padded gamma/beta are 0 -> lanes stay 0

    x = x_ref[...]                                       # (R, D_PAD) f32

    # Fully unrolled layer loop: all weights already VMEM-resident (fine at L=2 / toy size).
    for l in range(num_layers):
        # ---- layer_norm1 + QKV projections (attention scale pre-folded into wq/bq) ----
        xn = layer_norm(x, ln1_g[l], ln1_b[l])
        xn_bf = xn.astype(jnp.bfloat16)                  # cast ONCE, reused for q/k/v
        q = jnp.dot(xn_bf, wq[l], preferred_element_type=jnp.float32) + bq[l]
        k = jnp.dot(xn_bf, wk[l], preferred_element_type=jnp.float32) + bk[l]
        v = jnp.dot(xn_bf, wv[l], preferred_element_type=jnp.float32) + bv[l]

        # ---- multi-head attention via a block-expanded (head*row, channel) layout ----
        # Expanded row r = h*R + kr; blk zeroes channels of other heads so each wide
        # matmul computes exactly the per-head op.  (Toy-size-only trick; see TODO above.)
        kx_bf = (jnp.tile(k, (num_heads, 1)) * blk).astype(jnp.bfloat16)   # (H*R, D_PAD)
        vx_bf = (jnp.tile(v, (num_heads, 1)) * blk).astype(jnp.bfloat16)
        q_bf = q.astype(jnp.bfloat16)

        # scores s[qr, h*R + kr] = sum_{c in head h} q[qr, c] * k[kr, c]
        # (NT dot_general; the small RHS relayout is negligible at this size.)
        s = jax.lax.dot_general(q_bf, kx_bf, (((1,), (1,)), ((), ())),
                                preferred_element_type=jnp.float32)
        s = s + amask                                    # forbid cross-batch attention
        s = s - jnp.max(s, axis=-1, keepdims=True)       # per-query/per-batch max (exact)
        e = jnp.exp(s)                                   # f32 softmax math

        # per-(head,batch) softmax denominator via a block-sum matmul (f32 for accuracy)
        den = jnp.dot(e, bsum, preferred_element_type=jnp.float32)
        p = e * pl.reciprocal(jnp.maximum(den, 1e-30), approx=True)

        # context lands directly in the concatenated-heads channel layout (no merge)
        ctx = jnp.dot(p.astype(jnp.bfloat16), vx_bf, preferred_element_type=jnp.float32)
        attn = jnp.dot(ctx.astype(jnp.bfloat16), wo[l],
                       preferred_element_type=jnp.float32) + bo[l]

        h1 = x + attn                                    # residual 1

        # ---- layer_norm2 + MLP (quick_gelu) ----
        h1n = layer_norm(h1, ln2_g[l], ln2_b[l])
        z = jnp.dot(h1n.astype(jnp.bfloat16), w1[l],
                    preferred_element_type=jnp.float32) + b1[l]
        z = z * jax.nn.sigmoid(1.702 * z)                # quick_gelu, f32
        z = jnp.dot(z.astype(jnp.bfloat16), w2[l],
                    preferred_element_type=jnp.float32) + b2[l]

        x = h1 + z                                       # residual 2

    out_ref[...] = x                                     # single lane-dense unmasked store


# ----------------------------- host-side constant masks -------------------------------
def build_masks(batch, seq, d_model, num_heads, head_dim):
    R = batch * seq
    HS = num_heads * R
    cols = np.arange(D_PAD)
    rows_exp = np.arange(HS)                 # expanded row r = h*R + (b*seq + s)
    q_rows = np.arange(R)

    ch_mask = np.broadcast_to((cols < d_model).astype(np.float32), (R, D_PAD)).copy()

    head_of_row = rows_exp // R
    head_of_col = cols // head_dim
    blk = ((head_of_row[:, None] == head_of_col[None, :]) &
           (cols[None, :] < d_model)).astype(np.float32)

    same_head = head_of_row[:, None] == head_of_row[None, :]
    batch_of_row = (rows_exp % R) // seq
    same_batch = batch_of_row[:, None] == batch_of_row[None, :]
    bsum = (same_head & same_batch).astype(np.float32)

    q_batch = q_rows // seq
    amask = np.where(q_batch[:, None] == batch_of_row[None, :], 0.0, -1e9).astype(np.float32)

    return {"ch_mask": jnp.asarray(ch_mask), "blk": jnp.asarray(blk),
            "bsum": jnp.asarray(bsum), "amask": jnp.asarray(amask)}


# ----------------------------- host-side parameter prep -------------------------------
def _pad_to(a, shape):
    out = np.zeros(shape, np.float32)
    out[tuple(slice(0, s) for s in a.shape)] = np.asarray(a, np.float32)
    return out


def prepare_params(layer_params):
    """Stack per-layer params with a leading layer axis, fold the attention scale into
    the q projection, zero-pad to lane-dense shapes, cast matmul weights to bf16."""
    def stack_w(name, rows, cols, scale=1.0):
        return jnp.asarray(
            np.stack([_pad_to(np.asarray(p[name]) * scale, (rows, cols))
                      for p in layer_params]), dtype=jnp.bfloat16)

    def stack_v(name, cols, scale=1.0):
        return jnp.asarray(
            np.stack([_pad_to(np.asarray(p[name]).reshape(1, -1) * scale, (1, cols))
                      for p in layer_params]), dtype=jnp.float32)

    return {
        "ln1_g": stack_v("ln1_g", D_PAD), "ln1_b": stack_v("ln1_b", D_PAD),
        "wq": stack_w("wq", D_PAD, D_PAD, SCALE), "bq": stack_v("bq", D_PAD, SCALE),
        "wk": stack_w("wk", D_PAD, D_PAD), "bk": stack_v("bk", D_PAD),
        "wv": stack_w("wv", D_PAD, D_PAD), "bv": stack_v("bv", D_PAD),
        "wo": stack_w("wo", D_PAD, D_PAD), "bo": stack_v("bo", D_PAD),
        "ln2_g": stack_v("ln2_g", D_PAD), "ln2_b": stack_v("ln2_b", D_PAD),
        "w1": stack_w("w1", D_PAD, I_PAD), "b1": stack_v("b1", I_PAD),
        "w2": stack_w("w2", I_PAD, D_PAD), "b2": stack_v("b2", D_PAD),
    }


# ----------------------------- wrapper: one pallas_call for the whole stack -----------
def clip_encoder(inputs_embeds, prepared, masks):
    """CLIPEncoder.forward, standard path (inputs_size=None, no masks, no dropout)."""
    B, S, D = inputs_embeds.shape
    R = B * S
    x = jnp.zeros((R, D_PAD), jnp.float32).at[:, :D].set(
        inputs_embeds.reshape(R, D).astype(jnp.float32))

    kernel = functools.partial(
        _encoder_stack_kernel,
        num_layers=NUM_LAYERS, d_model=D, num_heads=NUM_HEADS, eps=LN_EPS)

    # No grid: a single invocation; every operand (input, masks, all stacked layer
    # weights ~0.4 MiB) is placed whole in VMEM and stays resident for all layers.
    out = pl.pallas_call(
        kernel,
        out_shape=jax.ShapeDtypeStruct((R, D_PAD), jnp.float32),
    )(x, *(masks[n] for n in _MASK_NAMES), *(prepared[n] for n in _PARAM_NAMES))

    return out[:, :D].reshape(B, S, D)


# ----------------------------- pure-JAX f32 reference (module semantics) --------------
def _ref_layer(x, p):
    def ln(h, g, b):
        mu = jnp.mean(h, -1, keepdims=True)
        var = jnp.mean((h - mu) ** 2, -1, keepdims=True)
        return (h - mu) / jnp.sqrt(var + LN_EPS) * g + b

    B, S, D = x.shape
    xn = ln(x, p["ln1_g"], p["ln1_b"])
    q = (xn @ p["wq"] + p["bq"]) * SCALE
    k = xn @ p["wk"] + p["bk"]
    v = xn @ p["wv"] + p["bv"]
    qh = q.reshape(B, S, NUM_HEADS, HEAD_DIM).transpose(0, 2, 1, 3)
    kh = k.reshape(B, S, NUM_HEADS, HEAD_DIM).transpose(0, 2, 1, 3)
    vh = v.reshape(B, S, NUM_HEADS, HEAD_DIM).transpose(0, 2, 1, 3)
    s = jnp.einsum("bhqd,bhkd->bhqk", qh, kh)
    pr = jax.nn.softmax(s, axis=-1)
    o = jnp.einsum("bhqk,bhkd->bhqd", pr, vh).transpose(0, 2, 1, 3).reshape(B, S, D)
    o = o @ p["wo"] + p["bo"]
    h1 = x + o
    h1n = ln(h1, p["ln2_g"], p["ln2_b"])
    z = h1n @ p["w1"] + p["b1"]
    z = z * jax.nn.sigmoid(1.702 * z)
    z = z @ p["w2"] + p["b2"]
    return h1 + z


def _ref_encoder(x, layer_params):
    for p in layer_params:
        x = _ref_layer(x, p)
    return x


# ----------------------------- main ----------------------------------------------------
def _init_layer_params(key):
    ks = jax.random.split(key, 16)
    D, I = HIDDEN, INTERMEDIATE
    w = lambda k, shp: (0.02 * jax.random.normal(k, shp)).astype(jnp.float32)
    return {
        "ln1_g": (1.0 + 0.1 * jax.random.normal(ks[0], (D,))).astype(jnp.float32),
        "ln1_b": w(ks[1], (D,)),
        "wq": w(ks[2], (D, D)), "bq": w(ks[3], (D,)),
        "wk": w(ks[4], (D, D)), "bk": w(ks[5], (D,)),
        "wv": w(ks[6], (D, D)), "bv": w(ks[7], (D,)),
        "wo": w(ks[8], (D, D)), "bo": w(ks[9], (D,)),
        "ln2_g": (1.0 + 0.1 * jax.random.normal(ks[10], (D,))).astype(jnp.float32),
        "ln2_b": w(ks[11], (D,)),
        "w1": w(ks[12], (D, I)), "b1": w(ks[13], (I,)),
        "w2": w(ks[14], (I, D)), "b2": w(ks[15], (D,)),
    }


if __name__ == "__main__":
    key = jax.random.PRNGKey(0)
    k_in, *k_layers = jax.random.split(key, NUM_LAYERS + 1)

    inputs_embeds = jax.random.normal(k_in, (BATCH, SEQ, HIDDEN), dtype=jnp.float32)
    layer_params = [_init_layer_params(k) for k in k_layers]
    prepared = prepare_params(layer_params)
    masks = build_masks(BATCH, SEQ, HIDDEN, NUM_HEADS, HEAD_DIM)

    out = jax.block_until_ready(clip_encoder(inputs_embeds, prepared, masks))
    ref = jax.block_until_ready(_ref_encoder(inputs_embeds, layer_params))

    # bf16 MXU operands + approximate reciprocal -> compare against the f32 module
    # reference with a correspondingly loosened tolerance (intentional inference approx).
    np.testing.assert_allclose(np.asarray(out), np.asarray(ref), rtol=1e-2, atol=1e-2)

    print("KERNEL_OK")
</pallas_src>

<mosaic_0001>
module attributes {stable_mosaic.version = 11 : i64} {
  func.func @_encoder_stack_kernel(%arg0: memref<16x128xf32, #tpu.memory_space<vmem>>, %arg1: memref<16x128xf32, #tpu.memory_space<vmem>>, %arg2: memref<64x128xf32, #tpu.memory_space<vmem>>, %arg3: memref<64x64xf32, #tpu.memory_space<vmem>>, %arg4: memref<16x64xf32, #tpu.memory_space<vmem>>, %arg5: memref<2x1x128xf32, #tpu.memory_space<vmem>>, %arg6: memref<2x1x128xf32, #tpu.memory_space<vmem>>, %arg7: memref<2x128x128xbf16, #tpu.memory_space<vmem>>, %arg8: memref<2x1x128xf32, #tpu.memory_space<vmem>>, %arg9: memref<2x128x128xbf16, #tpu.memory_space<vmem>>, %arg10: memref<2x1x128xf32, #tpu.memory_space<vmem>>, %arg11: memref<2x128x128xbf16, #tpu.memory_space<vmem>>, %arg12: memref<2x1x128xf32, #tpu.memory_space<vmem>>, %arg13: memref<2x128x128xbf16, #tpu.memory_space<vmem>>, %arg14: memref<2x1x128xf32, #tpu.memory_space<vmem>>, %arg15: memref<2x1x128xf32, #tpu.memory_space<vmem>>, %arg16: memref<2x1x128xf32, #tpu.memory_space<vmem>>, %arg17: memref<2x128x128xbf16, #tpu.memory_space<vmem>>, %arg18: memref<2x1x128xf32, #tpu.memory_space<vmem>>, %arg19: memref<2x128x128xbf16, #tpu.memory_space<vmem>>, %arg20: memref<2x1x128xf32, #tpu.memory_space<vmem>>, %arg21: memref<16x128xf32, #tpu.memory_space<vmem>>) attributes {dimension_semantics = [], scalar_prefetch = 0 : i64, scratch_operands = 0 : i64, tpu.core_type = #tpu.core_type<tc>} {
    %c0 = arith.constant 0 : index
    %c0_0 = arith.constant 0 : index
    %0 = vector.load %arg1[%c0, %c0_0] : memref<16x128xf32, #tpu.memory_space<vmem>>, vector<16x128xf32>
    %c0_1 = arith.constant 0 : index
    %c0_2 = arith.constant 0 : index
    %1 = vector.load %arg2[%c0_1, %c0_2] : memref<64x128xf32, #tpu.memory_space<vmem>>, vector<64x128xf32>
    %c0_3 = arith.constant 0 : index
    %c0_4 = arith.constant 0 : index
    %2 = vector.load %arg3[%c0_3, %c0_4] : memref<64x64xf32, #tpu.memory_space<vmem>>, vector<64x64xf32>
    %c0_5 = arith.constant 0 : index
    %c0_6 = arith.constant 0 : index
    %3 = vector.load %arg4[%c0_5, %c0_6] : memref<16x64xf32, #tpu.memory_space<vmem>>, vector<16x64xf32>
    %c0_7 = arith.constant 0 : index
    %c0_8 = arith.constant 0 : index
    %4 = vector.load %arg0[%c0_7, %c0_8] : memref<16x128xf32, #tpu.memory_space<vmem>>, vector<16x128xf32>
    %c0_9 = arith.constant 0 : index
    %c0_10 = arith.constant 0 : index
    %c0_11 = arith.constant 0 : index
    %5 = vector.load %arg5[%c0_9, %c0_10, %c0_11] : memref<2x1x128xf32, #tpu.memory_space<vmem>>, vector<1x1x128xf32>
    %6 = vector.shape_cast %5 : vector<1x1x128xf32> to vector<1x128xf32>
    %c0_12 = arith.constant 0 : index
    %c0_13 = arith.constant 0 : index
    %c0_14 = arith.constant 0 : index
    %7 = vector.load %arg6[%c0_12, %c0_13, %c0_14] : memref<2x1x128xf32, #tpu.memory_space<vmem>>, vector<1x1x128xf32>
    %8 = vector.shape_cast %7 : vector<1x1x128xf32> to vector<1x128xf32>
    %cst = arith.constant dense<0.000000e+00> : vector<16xf32>
    %9 = vector.multi_reduction <add>, %4, %cst [1] : vector<16x128xf32> to vector<16xf32>
    %10 = vector.shape_cast %9 : vector<16xf32> to vector<16x1xf32>
    %cst_15 = arith.constant 3.125000e-02 : f32
    %11 = vector.broadcast %cst_15 : f32 to vector<16x1xf32>
    %12 = arith.mulf %10, %11 : vector<16x1xf32>
    %13 = vector.broadcast %12 : vector<16x1xf32> to vector<16x128xf32>
    %14 = arith.subf %4, %13 : vector<16x128xf32>
    %15 = arith.mulf %14, %0 : vector<16x128xf32>
    %16 = arith.mulf %15, %15 : vector<16x128xf32>
    %cst_16 = arith.constant dense<0.000000e+00> : vector<16xf32>
    %17 = vector.multi_reduction <add>, %16, %cst_16 [1] : vector<16x128xf32> to vector<16xf32>
    %18 = vector.shape_cast %17 : vector<16xf32> to vector<16x1xf32>
    %cst_17 = arith.constant 3.125000e-02 : f32
    %19 = vector.broadcast %cst_17 : f32 to vector<16x1xf32>
    %20 = arith.mulf %18, %19 : vector<16x1xf32>
    %cst_18 = arith.constant 9.99999974E-6 : f32
    %21 = vector.broadcast %cst_18 : f32 to vector<16x1xf32>
    %22 = arith.addf %20, %21 : vector<16x1xf32>
    %23 = math.rsqrt %22 : vector<16x1xf32>
    %24 = vector.broadcast %23 : vector<16x1xf32> to vector<16x128xf32>
    %25 = arith.mulf %15, %24 : vector<16x128xf32>
    %26 = vector.broadcast %6 : vector<1x128xf32> to vector<16x128xf32>
    %27 = arith.mulf %25, %26 : vector<16x128xf32>
    %28 = vector.broadcast %8 : vector<1x128xf32> to vector<16x128xf32>
    %29 = arith.addf %27, %28 : vector<16x128xf32>
    %30 = arith.truncf %29 : vector<16x128xf32> to vector<16x128xbf16>
    %c0_19 = arith.constant 0 : index
    %c0_20 = arith.constant 0 : index
    %c0_21 = arith.constant 0 : index
    %31 = vector.load %arg7[%c0_19, %c0_20, %c0_21] : memref<2x128x128xbf16, #tpu.memory_space<vmem>>, vector<1x128x128xbf16>
    %32 = vector.shape_cast %31 : vector<1x128x128xbf16> to vector<128x128xbf16>
    %cst_22 = arith.constant dense<0.000000e+00> : vector<16x128xf32>
    %33 = tpu.matmul %30, %32, %cst_22 {dimension_numbers = #tpu.dot_dimension_numbers<[1], [0], [0], [1], [0, 0, 1, 1], [], []>} : vector<16x128xbf16>, vector<128x128xbf16>, vector<16x128xf32> -> vector<16x128xf32>
    %c0_23 = arith.constant 0 : index
    %c0_24 = arith.constant 0 : index
    %c0_25 = arith.constant 0 : index
    %34 = vector.load %arg8[%c0_23, %c0_24, %c0_25] : memref<2x1x128xf32, #tpu.memory_space<vmem>>, vector<1x1x128xf32>
    %35 = vector.shape_cast %34 : vector<1x1x128xf32> to vector<1x128xf32>
    %36 = vector.broadcast %35 : vector<1x128xf32> to vector<16x128xf32>
    %37 = arith.addf %33, %36 : vector<16x128xf32>
    %c0_26 = arith.constant 0 : index
    %c0_27 = arith.constant 0 : index
    %c0_28 = arith.constant 0 : index
    %38 = vector.load %arg9[%c0_26, %c0_27, %c0_28] : memref<2x128x128xbf16, #tpu.memory_space<vmem>>, vector<1x128x128xbf16>
    %39 = vector.shape_cast %38 : vector<1x128x128xbf16> to vector<128x128xbf16>
    %cst_29 = arith.constant dense<0.000000e+00> : vector<16x128xf32>
    %40 = tpu.matmul %30, %39, %cst_29 {dimension_numbers = #tpu.dot_dimension_numbers<[1], [0], [0], [1], [0, 0, 1, 1], [], []>} : vector<16x128xbf16>, vector<128x128xbf16>, vector<16x128xf32> -> vector<16x128xf32>
    %c0_30 = arith.constant 0 : index
    %c0_31 = arith.constant 0 : index
    %c0_32 = arith.constant 0 : index
    %41 = vector.load %arg10[%c0_30, %c0_31, %c0_32] : memref<2x1x128xf32, #tpu.memory_space<vmem>>, vector<1x1x128xf32>
    %42 = vector.shape_cast %41 : vector<1x1x128xf32> to vector<1x128xf32>
    %43 = vector.broadcast %42 : vector<1x128xf32> to vector<16x128xf32>
    %44 = arith.addf %40, %43 : vector<16x128xf32>
    %c0_33 = arith.constant 0 : index
    %c0_34 = arith.constant 0 : index
    %c0_35 = arith.constant 0 : index
    %45 = vector.load %arg11[%c0_33, %c0_34, %c0_35] : memref<2x128x128xbf16, #tpu.memory_space<vmem>>, vector<1x128x128xbf16>
    %46 = vector.shape_cast %45 : vector<1x128x128xbf16> to vector<128x128xbf16>
    %cst_36 = arith.constant dense<0.000000e+00> : vector<16x128xf32>
    %47 = tpu.matmul %30, %46, %cst_36 {dimension_numbers = #tpu.dot_dimension_numbers<[1], [0], [0], [1], [0, 0, 1, 1], [], []>} : vector<16x128xbf16>, vector<128x128xbf16>, vector<16x128xf32> -> vector<16x128xf32>
    %c0_37 = arith.constant 0 : index
    %c0_38 = arith.constant 0 : index
    %c0_39 = arith.constant 0 : index
    %48 = vector.load %arg12[%c0_37, %c0_38, %c0_39] : memref<2x1x128xf32, #tpu.memory_space<vmem>>, vector<1x1x128xf32>
    %49 = vector.shape_cast %48 : vector<1x1x128xf32> to vector<1x128xf32>
    %50 = vector.broadcast %49 : vector<1x128xf32> to vector<16x128xf32>
    %51 = arith.addf %47, %50 : vector<16x128xf32>
    %52 = tpu.concatenate %44, %44, %44, %44 in 0 : vector<16x128xf32>, vector<16x128xf32>, vector<16x128xf32>, vector<16x128xf32> -> vector<64x128xf32>
    %53 = arith.mulf %52, %1 : vector<64x128xf32>
    %54 = arith.truncf %53 : vector<64x128xf32> to vector<64x128xbf16>
    %55 = tpu.concatenate %51, %51, %51, %51 in 0 : vector<16x128xf32>, vector<16x128xf32>, vector<16x128xf32>, vector<16x128xf32> -> vector<64x128xf32>
    %56 = arith.mulf %55, %1 : vector<64x128xf32>
    %57 = arith.truncf %56 : vector<64x128xf32> to vector<64x128xbf16>
    %58 = arith.truncf %37 : vector<16x128xf32> to vector<16x128xbf16>
    %cst_40 = arith.constant dense<0.000000e+00> : vector<16x64xf32>
    %59 = tpu.matmul %58, %54, %cst_40 {dimension_numbers = #tpu.dot_dimension_numbers<[1], [1], [0], [0], [0, 0, 1, 0], [], []>} : vector<16x128xbf16>, vector<64x128xbf16>, vector<16x64xf32> -> vector<16x64xf32>
    %60 = arith.addf %59, %3 : vector<16x64xf32>
    %cst_41 = arith.constant dense<0xFF800000> : vector<16xf32>
    %61 = vector.multi_reduction <maximumf>, %60, %cst_41 [1] : vector<16x64xf32> to vector<16xf32>
    %62 = vector.shape_cast %61 : vector<16xf32> to vector<16x1xf32>
    %63 = vector.broadcast %62 : vector<16x1xf32> to vector<16x64xf32>
    %64 = arith.subf %60, %63 : vector<16x64xf32>
    %65 = math.exp %64 : vector<16x64xf32>
    %cst_42 = arith.constant dense<0.000000e+00> : vector<16x64xf32>
    %66 = tpu.matmul %65, %2, %cst_42 {dimension_numbers = #tpu.dot_dimension_numbers<[1], [0], [0], [1], [0, 0, 1, 1], [], []>} : vector<16x64xf32>, vector<64x64xf32>, vector<16x64xf32> -> vector<16x64xf32>
    %cst_43 = arith.constant 1.000000e-30 : f32
    %67 = vector.broadcast %cst_43 : f32 to vector<16x64xf32>
    %68 = arith.maximumf %66, %67 : vector<16x64xf32>
    %69 = tpu.reciprocal %68 {approx = true} : vector<16x64xf32> -> vector<16x64xf32>
    %70 = arith.mulf %65, %69 : vector<16x64xf32>
    %71 = arith.truncf %70 : vector<16x64xf32> to vector<16x64xbf16>
    %cst_44 = arith.constant dense<0.000000e+00> : vector<16x128xf32>
    %72 = tpu.matmul %71, %57, %cst_44 {dimension_numbers = #tpu.dot_dimension_numbers<[1], [0], [0], [1], [0, 0, 1, 1], [], []>} : vector<16x64xbf16>, vector<64x128xbf16>, vector<16x128xf32> -> vector<16x128xf32>
    %73 = arith.truncf %72 : vector<16x128xf32> to vector<16x128xbf16>
    %c0_45 = arith.constant 0 : index
    %c0_46 = arith.constant 0 : index
    %c0_47 = arith.constant 0 : index
    %74 = vector.load %arg13[%c0_45, %c0_46, %c0_47] : memref<2x128x128xbf16, #tpu.memory_space<vmem>>, vector<1x128x128xbf16>
    %75 = vector.shape_cast %74 : vector<1x128x128xbf16> to vector<128x128xbf16>
    %cst_48 = arith.constant dense<0.000000e+00> : vector<16x128xf32>
    %76 = tpu.matmul %73, %75, %cst_48 {dimension_numbers = #tpu.dot_dimension_numbers<[1], [0], [0], [1], [0, 0, 1, 1], [], []>} : vector<16x128xbf16>, vector<128x128xbf16>, vector<16x128xf32> -> vector<16x128xf32>
    %c0_49 = arith.constant 0 : index
    %c0_50 = arith.constant 0 : index
    %c0_51 = arith.constant 0 : index
    %77 = vector.load %arg14[%c0_49, %c0_50, %c0_51] : memref<2x1x128xf32, #tpu.memory_space<vmem>>, vector<1x1x128xf32>
    %78 = vector.shape_cast %77 : vector<1x1x128xf32> to vector<1x128xf32>
    %79 = vector.broadcast %78 : vector<1x128xf32> to vector<16x128xf32>
    %80 = arith.addf %76, %79 : vector<16x128xf32>
    %81 = arith.addf %4, %80 : vector<16x128xf32>
    %c0_52 = arith.constant 0 : index
    %c0_53 = arith.constant 0 : index
    %c0_54 = arith.constant 0 : index
    %82 = vector.load %arg15[%c0_52, %c0_53, %c0_54] : memref<2x1x128xf32, #tpu.memory_space<vmem>>, vector<1x1x128xf32>
    %83 = vector.shape_cast %82 : vector<1x1x128xf32> to vector<1x128xf32>
    %c0_55 = arith.constant 0 : index
    %c0_56 = arith.constant 0 : index
    %c0_57 = arith.constant 0 : index
    %84 = vector.load %arg16[%c0_55, %c0_56, %c0_57] : memref<2x1x128xf32, #tpu.memory_space<vmem>>, vector<1x1x128xf32>
    %85 = vector.shape_cast %84 : vector<1x1x128xf32> to vector<1x128xf32>
    %cst_58 = arith.constant dense<0.000000e+00> : vector<16xf32>
    %86 = vector.multi_reduction <add>, %81, %cst_58 [1] : vector<16x128xf32> to vector<16xf32>
    %87 = vector.shape_cast %86 : vector<16xf32> to vector<16x1xf32>
    %cst_59 = arith.constant 3.125000e-02 : f32
    %88 = vector.broadcast %cst_59 : f32 to vector<16x1xf32>
    %89 = arith.mulf %87, %88 : vector<16x1xf32>
    %90 = vector.broadcast %89 : vector<16x1xf32> to vector<16x128xf32>
    %91 = arith.subf %81, %90 : vector<16x128xf32>
    %92 = arith.mulf %91, %0 : vector<16x128xf32>
    %93 = arith.mulf %92, %92 : vector<16x128xf32>
    %cst_60 = arith.constant dense<0.000000e+00> : vector<16xf32>
    %94 = vector.multi_reduction <add>, %93, %cst_60 [1] : vector<16x128xf32> to vector<16xf32>
    %95 = vector.shape_cast %94 : vector<16xf32> to vector<16x1xf32>
    %cst_61 = arith.constant 3.125000e-02 : f32
    %96 = vector.broadcast %cst_61 : f32 to vector<16x1xf32>
    %97 = arith.mulf %95, %96 : vector<16x1xf32>
    %cst_62 = arith.constant 9.99999974E-6 : f32
    %98 = vector.broadcast %cst_62 : f32 to vector<16x1xf32>
    %99 = arith.addf %97, %98 : vector<16x1xf32>
    %100 = math.rsqrt %99 : vector<16x1xf32>
    %101 = vector.broadcast %100 : vector<16x1xf32> to vector<16x128xf32>
    %102 = arith.mulf %92, %101 : vector<16x128xf32>
    %103 = vector.broadcast %83 : vector<1x128xf32> to vector<16x128xf32>
    %104 = arith.mulf %102, %103 : vector<16x128xf32>
    %105 = vector.broadcast %85 : vector<1x128xf32> to vector<16x128xf32>
    %106 = arith.addf %104, %105 : vector<16x128xf32>
    %107 = arith.truncf %106 : vector<16x128xf32> to vector<16x128xbf16>
    %c0_63 = arith.constant 0 : index
    %c0_64 = arith.constant 0 : index
    %c0_65 = arith.constant 0 : index
    %108 = vector.load %arg17[%c0_63, %c0_64, %c0_65] : memref<2x128x128xbf16, #tpu.memory_space<vmem>>, vector<1x128x128xbf16>
    %109 = vector.shape_cast %108 : vector<1x128x128xbf16> to vector<128x128xbf16>
    %cst_66 = arith.constant dense<0.000000e+00> : vector<16x128xf32>
    %110 = tpu.matmul %107, %109, %cst_66 {dimension_numbers = #tpu.dot_dimension_numbers<[1], [0], [0], [1], [0, 0, 1, 1], [], []>} : vector<16x128xbf16>, vector<128x128xbf16>, vector<16x128xf32> -> vector<16x128xf32>
    %c0_67 = arith.constant 0 : index
    %c0_68 = arith.constant 0 : index
    %c0_69 = arith.constant 0 : index
    %111 = vector.load %arg18[%c0_67, %c0_68, %c0_69] : memref<2x1x128xf32, #tpu.memory_space<vmem>>, vector<1x1x128xf32>
    %112 = vector.shape_cast %111 : vector<1x1x128xf32> to vector<1x128xf32>
    %113 = vector.broadcast %112 : vector<1x128xf32> to vector<16x128xf32>
    %114 = arith.addf %110, %113 : vector<16x128xf32>
    %cst_70 = arith.constant 1.702000e+00 : f32
    %115 = vector.broadcast %cst_70 : f32 to vector<16x128xf32>
    %116 = arith.mulf %115, %114 : vector<16x128xf32>
    %117 = arith.negf %116 : vector<16x128xf32>
    %118 = math.exp %117 : vector<16x128xf32>
    %cst_71 = arith.constant 1.000000e+00 : f32
    %119 = vector.broadcast %cst_71 : f32 to vector<16x128xf32>
    %120 = arith.addf %119, %118 : vector<16x128xf32>
    %121 = arith.divf %119, %120 : vector<16x128xf32>
    %122 = arith.mulf %114, %121 : vector<16x128xf32>
    %123 = arith.truncf %122 : vector<16x128xf32> to vector<16x128xbf16>
    %c0_72 = arith.constant 0 : index
    %c0_73 = arith.constant 0 : index
    %c0_74 = arith.constant 0 : index
    %124 = vector.load %arg19[%c0_72, %c0_73, %c0_74] : memref<2x128x128xbf16, #tpu.memory_space<vmem>>, vector<1x128x128xbf16>
    %125 = vector.shape_cast %124 : vector<1x128x128xbf16> to vector<128x128xbf16>
    %cst_75 = arith.constant dense<0.000000e+00> : vector<16x128xf32>
    %126 = tpu.matmul %123, %125, %cst_75 {dimension_numbers = #tpu.dot_dimension_numbers<[1], [0], [0], [1], [0, 0, 1, 1], [], []>} : vector<16x128xbf16>, vector<128x128xbf16>, vector<16x128xf32> -> vector<16x128xf32>
    %c0_76 = arith.constant 0 : index
    %c0_77 = arith.constant 0 : index
    %c0_78 = arith.constant 0 : index
    %127 = vector.load %arg20[%c0_76, %c0_77, %c0_78] : memref<2x1x128xf32, #tpu.memory_space<vmem>>, vector<1x1x128xf32>
    %128 = vector.shape_cast %127 : vector<1x1x128xf32> to vector<1x128xf32>
    %129 = vector.broadcast %128 : vector<1x128xf32> to vector<16x128xf32>
    %130 = arith.addf %126, %129 : vector<16x128xf32>
    %131 = arith.addf %81, %130 : vector<16x128xf32>
    %c1 = arith.constant 1 : index
    %c0_79 = arith.constant 0 : index
    %c0_80 = arith.constant 0 : index
    %132 = vector.load %arg5[%c1, %c0_79, %c0_80] : memref<2x1x128xf32, #tpu.memory_space<vmem>>, vector<1x1x128xf32>
    %133 = vector.shape_cast %132 : vector<1x1x128xf32> to vector<1x128xf32>
    %c1_81 = arith.constant 1 : index
    %c0_82 = arith.constant 0 : index
    %c0_83 = arith.constant 0 : index
    %134 = vector.load %arg6[%c1_81, %c0_82, %c0_83] : memref<2x1x128xf32, #tpu.memory_space<vmem>>, vector<1x1x128xf32>
    %135 = vector.shape_cast %134 : vector<1x1x128xf32> to vector<1x128xf32>
    %cst_84 = arith.constant dense<0.000000e+00> : vector<16xf32>
    %136 = vector.multi_reduction <add>, %131, %cst_84 [1] : vector<16x128xf32> to vector<16xf32>
    %137 = vector.shape_cast %136 : vector<16xf32> to vector<16x1xf32>
    %cst_85 = arith.constant 3.125000e-02 : f32
    %138 = vector.broadcast %cst_85 : f32 to vector<16x1xf32>
    %139 = arith.mulf %137, %138 : vector<16x1xf32>
    %140 = vector.broadcast %139 : vector<16x1xf32> to vector<16x128xf32>
    %141 = arith.subf %131, %140 : vector<16x128xf32>
    %142 = arith.mulf %141, %0 : vector<16x128xf32>
    %143 = arith.mulf %142, %142 : vector<16x128xf32>
    %cst_86 = arith.constant dense<0.000000e+00> : vector<16xf32>
    %144 = vector.multi_reduction <add>, %143, %cst_86 [1] : vector<16x128xf32> to vector<16xf32>
    %145 = vector.shape_cast %144 : vector<16xf32> to vector<16x1xf32>
    %cst_87 = arith.constant 3.125000e-02 : f32
    %146 = vector.broadcast %cst_87 : f32 to vector<16x1xf32>
    %147 = arith.mulf %145, %146 : vector<16x1xf32>
    %cst_88 = arith.constant 9.99999974E-6 : f32
    %148 = vector.broadcast %cst_88 : f32 to vector<16x1xf32>
    %149 = arith.addf %147, %148 : vector<16x1xf32>
    %150 = math.rsqrt %149 : vector<16x1xf32>
    %151 = vector.broadcast %150 : vector<16x1xf32> to vector<16x128xf32>
    %152 = arith.mulf %142, %151 : vector<16x128xf32>
    %153 = vector.broadcast %133 : vector<1x128xf32> to vector<16x128xf32>
    %154 = arith.mulf %152, %153 : vector<16x128xf32>
    %155 = vector.broadcast %135 : vector<1x128xf32> to vector<16x128xf32>
    %156 = arith.addf %154, %155 : vector<16x128xf32>
    %157 = arith.truncf %156 : vector<16x128xf32> to vector<16x128xbf16>
    %c1_89 = arith.constant 1 : index
    %c0_90 = arith.constant 0 : index
    %c0_91 = arith.constant 0 : index
    %158 = vector.load %arg7[%c1_89, %c0_90, %c0_91] : memref<2x128x128xbf16, #tpu.memory_space<vmem>>, vector<1x128x128xbf16>
    %159 = vector.shape_cast %158 : vector<1x128x128xbf16> to vector<128x128xbf16>
    %cst_92 = arith.constant dense<0.000000e+00> : vector<16x128xf32>
    %160 = tpu.matmul %157, %159, %cst_92 {dimension_numbers = #tpu.dot_dimension_numbers<[1], [0], [0], [1], [0, 0, 1, 1], [], []>} : vector<16x128xbf16>, vector<128x128xbf16>, vector<16x128xf32> -> vector<16x128xf32>
    %c1_93 = arith.constant 1 : index
    %c0_94 = arith.constant 0 : index
    %c0_95 = arith.constant 0 : index
    %161 = vector.load %arg8[%c1_93, %c0_94, %c0_95] : memref<2x1x128xf32, #tpu.memory_space<vmem>>, vector<1x1x128xf32>
    %162 = vector.shape_cast %161 : vector<1x1x128xf32> to vector<1x128xf32>
    %163 = vector.broadcast %162 : vector<1x128xf32> to vector<16x128xf32>
    %164 = arith.addf %160, %163 : vector<16x128xf32>
    %c1_96 = arith.constant 1 : index
    %c0_97 = arith.constant 0 : index
    %c0_98 = arith.constant 0 : index
    %165 = vector.load %arg9[%c1_96, %c0_97, %c0_98] : memref<2x128x128xbf16, #tpu.memory_space<vmem>>, vector<1x128x128xbf16>
    %166 = vector.shape_cast %165 : vector<1x128x128xbf16> to vector<128x128xbf16>
    %cst_99 = arith.constant dense<0.000000e+00> : vector<16x128xf32>
    %167 = tpu.matmul %157, %166, %cst_99 {dimension_numbers = #tpu.dot_dimension_numbers<[1], [0], [0], [1], [0, 0, 1, 1], [], []>} : vector<16x128xbf16>, vector<128x128xbf16>, vector<16x128xf32> -> vector<16x128xf32>
    %c1_100 = arith.constant 1 : index
    %c0_101 = arith.constant 0 : index
    %c0_102 = arith.constant 0 : index
    %168 = vector.load %arg10[%c1_100, %c0_101, %c0_102] : memref<2x1x128xf32, #tpu.memory_space<vmem>>, vector<1x1x128xf32>
    %169 = vector.shape_cast %168 : vector<1x1x128xf32> to vector<1x128xf32>
    %170 = vector.broadcast %169 : vector<1x128xf32> to vector<16x128xf32>
    %171 = arith.addf %167, %170 : vector<16x128xf32>
    %c1_103 = arith.constant 1 : index
    %c0_104 = arith.constant 0 : index
    %c0_105 = arith.constant 0 : index
    %172 = vector.load %arg11[%c1_103, %c0_104, %c0_105] : memref<2x128x128xbf16, #tpu.memory_space<vmem>>, vector<1x128x128xbf16>
    %173 = vector.shape_cast %172 : vector<1x128x128xbf16> to vector<128x128xbf16>
    %cst_106 = arith.constant dense<0.000000e+00> : vector<16x128xf32>
    %174 = tpu.matmul %157, %173, %cst_106 {dimension_numbers = #tpu.dot_dimension_numbers<[1], [0], [0], [1], [0, 0, 1, 1], [], []>} : vector<16x128xbf16>, vector<128x128xbf16>, vector<16x128xf32> -> vector<16x128xf32>
    %c1_107 = arith.constant 1 : index
    %c0_108 = arith.constant 0 : index
    %c0_109 = arith.constant 0 : index
    %175 = vector.load %arg12[%c1_107, %c0_108, %c0_109] : memref<2x1x128xf32, #tpu.memory_space<vmem>>, vector<1x1x128xf32>
    %176 = vector.shape_cast %175 : vector<1x1x128xf32> to vector<1x128xf32>
    %177 = vector.broadcast %176 : vector<1x128xf32> to vector<16x128xf32>
    %178 = arith.addf %174, %177 : vector<16x128xf32>
    %179 = tpu.concatenate %171, %171, %171, %171 in 0 : vector<16x128xf32>, vector<16x128xf32>, vector<16x128xf32>, vector<16x128xf32> -> vector<64x128xf32>
    %180 = arith.mulf %179, %1 : vector<64x128xf32>
    %181 = arith.truncf %180 : vector<64x128xf32> to vector<64x128xbf16>
    %182 = tpu.concatenate %178, %178, %178, %178 in 0 : vector<16x128xf32>, vector<16x128xf32>, vector<16x128xf32>, vector<16x128xf32> -> vector<64x128xf32>
    %183 = arith.mulf %182, %1 : vector<64x128xf32>
    %184 = arith.truncf %183 : vector<64x128xf32> to vector<64x128xbf16>
    %185 = arith.truncf %164 : vector<16x128xf32> to vector<16x128xbf16>
    %cst_110 = arith.constant dense<0.000000e+00> : vector<16x64xf32>
    %186 = tpu.matmul %185, %181, %cst_110 {dimension_numbers = #tpu.dot_dimension_numbers<[1], [1], [0], [0], [0, 0, 1, 0], [], []>} : vector<16x128xbf16>, vector<64x128xbf16>, vector<16x64xf32> -> vector<16x64xf32>
    %187 = arith.addf %186, %3 : vector<16x64xf32>
    %cst_111 = arith.constant dense<0xFF800000> : vector<16xf32>
    %188 = vector.multi_reduction <maximumf>, %187, %cst_111 [1] : vector<16x64xf32> to vector<16xf32>
    %189 = vector.shape_cast %188 : vector<16xf32> to vector<16x1xf32>
    %190 = vector.broadcast %189 : vector<16x1xf32> to vector<16x64xf32>
    %191 = arith.subf %187, %190 : vector<16x64xf32>
    %192 = math.exp %191 : vector<16x64xf32>
    %cst_112 = arith.constant dense<0.000000e+00> : vector<16x64xf32>
    %193 = tpu.matmul %192, %2, %cst_112 {dimension_numbers = #tpu.dot_dimension_numbers<[1], [0], [0], [1], [0, 0, 1, 1], [], []>} : vector<16x64xf32>, vector<64x64xf32>, vector<16x64xf32> -> vector<16x64xf32>
    %cst_113 = arith.constant 1.000000e-30 : f32
    %194 = vector.broadcast %cst_113 : f32 to vector<16x64xf32>
    %195 = arith.maximumf %193, %194 : vector<16x64xf32>
    %196 = tpu.reciprocal %195 {approx = true} : vector<16x64xf32> -> vector<16x64xf32>
    %197 = arith.mulf %192, %196 : vector<16x64xf32>
    %198 = arith.truncf %197 : vector<16x64xf32> to vector<16x64xbf16>
    %cst_114 = arith.constant dense<0.000000e+00> : vector<16x128xf32>
    %199 = tpu.matmul %198, %184, %cst_114 {dimension_numbers = #tpu.dot_dimension_numbers<[1], [0], [0], [1], [0, 0, 1, 1], [], []>} : vector<16x64xbf16>, vector<64x128xbf16>, vector<16x128xf32> -> vector<16x128xf32>
    %200 = arith.truncf %199 : vector<16x128xf32> to vector<16x128xbf16>
    %c1_115 = arith.constant 1 : index
    %c0_116 = arith.constant 0 : index
    %c0_117 = arith.constant 0 : index
    %201 = vector.load %arg13[%c1_115, %c0_116, %c0_117] : memref<2x128x128xbf16, #tpu.memory_space<vmem>>, vector<1x128x128xbf16>
    %202 = vector.shape_cast %201 : vector<1x128x128xbf16> to vector<128x128xbf16>
    %cst_118 = arith.constant dense<0.000000e+00> : vector<16x128xf32>
    %203 = tpu.matmul %200, %202, %cst_118 {dimension_numbers = #tpu.dot_dimension_numbers<[1], [0], [0], [1], [0, 0, 1, 1], [], []>} : vector<16x128xbf16>, vector<128x128xbf16>, vector<16x128xf32> -> vector<16x128xf32>
    %c1_119 = arith.constant 1 : index
    %c0_120 = arith.constant 0 : index
    %c0_121 = arith.constant 0 : index
    %204 = vector.load %arg14[%c1_119, %c0_120, %c0_121] : memref<2x1x128xf32, #tpu.memory_space<vmem>>, vector<1x1x128xf32>
    %205 = vector.shape_cast %204 : vector<1x1x128xf32> to vector<1x128xf32>
    %206 = vector.broadcast %205 : vector<1x128xf32> to vector<16x128xf32>
    %207 = arith.addf %203, %206 : vector<16x128xf32>
    %208 = arith.addf %131, %207 : vector<16x128xf32>
    %c1_122 = arith.constant 1 : index
    %c0_123 = arith.constant 0 : index
    %c0_124 = arith.constant 0 : index
    %209 = vector.load %arg15[%c1_122, %c0_123, %c0_124] : memref<2x1x128xf32, #tpu.memory_space<vmem>>, vector<1x1x128xf32>
    %210 = vector.shape_cast %209 : vector<1x1x128xf32> to vector<1x128xf32>
    %c1_125 = arith.constant 1 : index
    %c0_126 = arith.constant 0 : index
    %c0_127 = arith.constant 0 : index
    %211 = vector.load %arg16[%c1_125, %c0_126, %c0_127] : memref<2x1x128xf32, #tpu.memory_space<vmem>>, vector<1x1x128xf32>
    %212 = vector.shape_cast %211 : vector<1x1x128xf32> to vector<1x128xf32>
    %cst_128 = arith.constant dense<0.000000e+00> : vector<16xf32>
    %213 = vector.multi_reduction <add>, %208, %cst_128 [1] : vector<16x128xf32> to vector<16xf32>
    %214 = vector.shape_cast %213 : vector<16xf32> to vector<16x1xf32>
    %cst_129 = arith.constant 3.125000e-02 : f32
    %215 = vector.broadcast %cst_129 : f32 to vector<16x1xf32>
    %216 = arith.mulf %214, %215 : vector<16x1xf32>
    %217 = vector.broadcast %216 : vector<16x1xf32> to vector<16x128xf32>
    %218 = arith.subf %208, %217 : vector<16x128xf32>
    %219 = arith.mulf %218, %0 : vector<16x128xf32>
    %220 = arith.mulf %219, %219 : vector<16x128xf32>
    %cst_130 = arith.constant dense<0.000000e+00> : vector<16xf32>
    %221 = vector.multi_reduction <add>, %220, %cst_130 [1] : vector<16x128xf32> to vector<16xf32>
    %222 = vector.shape_cast %221 : vector<16xf32> to vector<16x1xf32>
    %cst_131 = arith.constant 3.125000e-02 : f32
    %223 = vector.broadcast %cst_131 : f32 to vector<16x1xf32>
    %224 = arith.mulf %222, %223 : vector<16x1xf32>
    %cst_132 = arith.constant 9.99999974E-6 : f32
    %225 = vector.broadcast %cst_132 : f32 to vector<16x1xf32>
    %226 = arith.addf %224, %225 : vector<16x1xf32>
    %227 = math.rsqrt %226 : vector<16x1xf32>
    %228 = vector.broadcast %227 : vector<16x1xf32> to vector<16x128xf32>
    %229 = arith.mulf %219, %228 : vector<16x128xf32>
    %230 = vector.broadcast %210 : vector<1x128xf32> to vector<16x128xf32>
    %231 = arith.mulf %229, %230 : vector<16x128xf32>
    %232 = vector.broadcast %212 : vector<1x128xf32> to vector<16x128xf32>
    %233 = arith.addf %231, %232 : vector<16x128xf32>
    %234 = arith.truncf %233 : vector<16x128xf32> to vector<16x128xbf16>
    %c1_133 = arith.constant 1 : index
    %c0_134 = arith.constant 0 : index
    %c0_135 = arith.constant 0 : index
    %235 = vector.load %arg17[%c1_133, %c0_134, %c0_135] : memref<2x128x128xbf16, #tpu.memory_space<vmem>>, vector<1x128x128xbf16>
    %236 = vector.shape_cast %235 : vector<1x128x128xbf16> to vector<128x128xbf16>
    %cst_136 = arith.constant dense<0.000000e+00> : vector<16x128xf32>
    %237 = tpu.matmul %234, %236, %cst_136 {dimension_numbers = #tpu.dot_dimension_numbers<[1], [0], [0], [1], [0, 0, 1, 1], [], []>} : vector<16x128xbf16>, vector<128x128xbf16>, vector<16x128xf32> -> vector<16x128xf32>
    %c1_137 = arith.constant 1 : index
    %c0_138 = arith.constant 0 : index
    %c0_139 = arith.constant 0 : index
    %238 = vector.load %arg18[%c1_137, %c0_138, %c0_139] : memref<2x1x128xf32, #tpu.memory_space<vmem>>, vector<1x1x128xf32>
    %239 = vector.shape_cast %238 : vector<1x1x128xf32> to vector<1x128xf32>
    %240 = vector.broadcast %239 : vector<1x128xf32> to vector<16x128xf32>
    %241 = arith.addf %237, %240 : vector<16x128xf32>
    %cst_140 = arith.constant 1.702000e+00 : f32
    %242 = vector.broadcast %cst_140 : f32 to vector<16x128xf32>
    %243 = arith.mulf %242, %241 : vector<16x128xf32>
    %244 = arith.negf %243 : vector<16x128xf32>
    %245 = math.exp %244 : vector<16x128xf32>
    %cst_141 = arith.constant 1.000000e+00 : f32
    %246 = vector.broadcast %cst_141 : f32 to vector<16x128xf32>
    %247 = arith.addf %246, %245 : vector<16x128xf32>
    %248 = arith.divf %246, %247 : vector<16x128xf32>
    %249 = arith.mulf %241, %248 : vector<16x128xf32>
    %250 = arith.truncf %249 : vector<16x128xf32> to vector<16x128xbf16>
    %c1_142 = arith.constant 1 : index
    %c0_143 = arith.constant 0 : index
    %c0_144 = arith.constant 0 : index
    %251 = vector.load %arg19[%c1_142, %c0_143, %c0_144] : memref<2x128x128xbf16, #tpu.memory_space<vmem>>, vector<1x128x128xbf16>
    %252 = vector.shape_cast %251 : vector<1x128x128xbf16> to vector<128x128xbf16>
    %cst_145 = arith.constant dense<0.000000e+00> : vector<16x128xf32>
    %253 = tpu.matmul %250, %252, %cst_145 {dimension_numbers = #tpu.dot_dimension_numbers<[1], [0], [0], [1], [0, 0, 1, 1], [], []>} : vector<16x128xbf16>, vector<128x128xbf16>, vector<16x128xf32> -> vector<16x128xf32>
    %c1_146 = arith.constant 1 : index
    %c0_147 = arith.constant 0 : index
    %c0_148 = arith.constant 0 : index
    %254 = vector.load %arg20[%c1_146, %c0_147, %c0_148] : memref<2x1x128xf32, #tpu.memory_space<vmem>>, vector<1x1x128xf32>
    %255 = vector.shape_cast %254 : vector<1x1x128xf32> to vector<1x128xf32>
    %256 = vector.broadcast %255 : vector<1x128xf32> to vector<16x128xf32>
    %257 = arith.addf %253, %256 : vector<16x128xf32>
    %258 = arith.addf %208, %257 : vector<16x128xf32>
    %c0_149 = arith.constant 0 : index
    %c0_150 = arith.constant 0 : index
    %259 = vector.load %arg21[%c0_149, %c0_150] : memref<16x128xf32, #tpu.memory_space<vmem>>, vector<16x128xf32>
    tpu.vector_store %arg21[%c0_149, %c0_150], %258 {strides = array<i32>} : memref<16x128xf32, #tpu.memory_space<vmem>>, vector<16x128xf32>,
    return
  }
}

</mosaic_0001>

<bundles_post_ra>
// kernel: tpu_custom_call.1
= control target key start
LH: loop header
LB: loop body
LE: loop exit
PB: predicated region body
PF: predicated region fallthrough
CT: control target
= control target key end

     0   :  { %s4008_s0 = inlined_call_operand.hbm [shape: f32[16,128], index: 0, kind: input, shape index: {}]   ;;  %s4009_s1 = inlined_call_operand.hbm [shape: f32[16,128], index: 1, kind: input, shape index: {}]   ;;  %s4010_s2 = inlined_call_operand.hbm [shape: f32[64,128], index: 2, kind: input, shape index: {}]   ;;  %s4011_s3 = inlined_call_operand.hbm [shape: f32[64,64], index: 3, kind: input, shape index: {}]   ;;  %s4012_s4 = inlined_call_operand.hbm [shape: f32[16,64], index: 4, kind: input, shape index: {}]   ;;  %s4013_s5 = inlined_call_operand.vmem [shape: f32[2,1,128], index: 5, kind: input, shape index: {}]   ;;  %s4014_s6 = inlined_call_operand.vmem [shape: f32[2,1,128], index: 6, kind: input, shape index: {}]   ;;  %s4015_s7 = inlined_call_operand.hbm [shape: bf16[2,128,128], index: 7, kind: input, shape index: {}]   ;;  %s4016_s8 = inlined_call_operand.vmem [shape: f32[2,1,128], index: 8, kind: input, shape index: {}]   ;;  %s4017_s9 = inlined_call_operand.hbm [shape: bf16[2,128,128], index: 9, kind: input, shape index: {}]   ;;  %s4018_s10 = inlined_call_operand.vmem [shape: f32[2,1,128], index: 10, kind: input, shape index: {}]   ;;  %s4019_s11 = inlined_call_operand.hbm [shape: bf16[2,128,128], index: 11, kind: input, shape index: {}]   ;;  %s4020_s12 = inlined_call_operand.vmem [shape: f32[2,1,128], index: 12, kind: input, shape index: {}]   ;;  %s4021_s13 = inlined_call_operand.hbm [shape: bf16[2,128,128], index: 13, kind: input, shape index: {}]   ;;  %s4022_s14 = inlined_call_operand.vmem [shape: f32[2,1,128], index: 14, kind: input, shape index: {}]   ;;  %s4023_s15 = inlined_call_operand.vmem [shape: f32[2,1,128], index: 15, kind: input, shape index: {}]   ;;  %s4024_s16 = inlined_call_operand.vmem [shape: f32[2,1,128], index: 16, kind: input, shape index: {}]   ;;  %s4025_s17 = inlined_call_operand.hbm [shape: bf16[2,128,128], index: 17, kind: input, shape index: {}]   ;;  %s4026_s18 = inlined_call_operand.vmem [shape: f32[2,1,128], index: 18, kind: input, shape index: {}]   ;;  %s4027_s19 = inlined_call_operand.hbm [shape: bf16[2,128,128], index: 19, kind: input, shape index: {}]   ;;  %s4028_s20 = inlined_call_operand.vmem [shape: f32[2,1,128], index: 20, kind: input, shape index: {}]   ;;  %s4029_s21 = inlined_call_operand.hbm [shape: f32[16,128], index: 21, kind: output, shape index: {}]  }
   0x1   :  { %4043 = sst [smem:[#allocation28_spill]] %s4008_s0 }
   0x2   :  { %4044 = sst [smem:[#allocation29_spill]] %s4009_s1 }
   0x3   :  { %4045 = sst [smem:[#allocation30_spill]] %s4010_s2 }
   0x4   :  { %4046 = sst [smem:[#allocation31_spill]] %s4011_s3 }
   0x5   :  { %4047 = sst [smem:[#allocation32_spill]] %s4012_s4 }
   0x6   :  { %4048 = sst [smem:[#allocation33_spill]] %s4013_s5 }
   0x7   :  { %4049 = sst [smem:[#allocation34_spill]] %s4029_s21 }
   0x8   :  { %26 = vsyncpa [#allocation3], 0 }
   0x9   :  { %27 = vsyncpa [#allocation6], 0 }
   0xa   :  { %28 = vsyncpa [#allocation9], 0 }
   0xb   :  { %29 = vsyncpa [#allocation12], 0 }
   0xc   :  { %30 = vsyncpa [#allocation15], 0 }
   0xd   :  { %31 = vsyncpa [#allocation18], 0 }
   0xe   :  { %32 = vsyncpa [#allocation4], 0  ;;  %s3346_s2 = smov [#allocation5]   ;;  %s3347_s26 = smov [#allocation8]  }
   0xf   :  { %s50_s25 = sshll.u32 %s3346_s2, 4  ;;  %s74_s27 = sshll.u32 %s3347_s26, 4  ;;  %s51_s25 = int_to_ptr.vmem [resolvable:$true] %s50_s25  ;;  %s3474_s27 = int_to_ptr.vmem [resolvable:$true] %s74_s27 }
  0x10   :  { %s4050_s29 = sld [smem:[#allocation29_spill]] }
  0x16   :  { %s3068_s0 = scalar_lea.hbm %s4050_s29, 256 }
  0x17   :  { %p3069_p0 = scmp.ne.s32.totalorder %s4050_s29, %s3068_s0  ;;  %p3072_p1 = scmp.lt.u32.totalorder %s3068_s0, %s4050_s29 }
  0x19   :  { %p3074_p2 = pnand %p3072_p1, %p3069_p0 }
  0x1b   :  { %3077 = shalt.err (!%p3074_p2)
}
  0x1c   :  { %s3078_s23 = scalar_lea.vmem %s51_s25, 256  ;;  %p3083_p4 = scmp.lt.s32.totalorder %s51_s25, %s51_s25 }
  0x1d   :  { %p3079_p3 = scmp.ne.s32.totalorder %s51_s25, %s3078_s23  ;;  %p3084_p5 = scmp.lt.s32.totalorder %s3078_s23, %s3078_s23 }
  0x1f   :  { %p3085_p6 = por %p3084_p5, %p3083_p4 }
  0x21   :  { %p3086_p7 = pnand %p3085_p6, %p3079_p3 }
  0x23   :  { %3089 = shalt.err (!%p3086_p7)
}
  0x24   :  { %s4037_s1 = smov 128   ;;  %s4039_s24 = smov 8  }
  0x25   :  { %56 = dma.hbm_to_vmem [thread:$0]  %s4050_s29, 256, %s51_s25, [#allocation6], %s4037_s1, %s4037_s1, %s4039_s24  }
  0x26   :  { %s4051_s0 = sld [smem:[#allocation31_spill]] }
  0x2c   :  { %s3090_s4 = scalar_lea.hbm %s4051_s0, 1024 }
  0x2d   :  { %p3091_p8 = scmp.ne.s32.totalorder %s4051_s0, %s3090_s4  ;;  %p3094_p9 = scmp.lt.u32.totalorder %s3090_s4, %s4051_s0 }
  0x2f   :  { %p3096_p10 = pnand %p3094_p9, %p3091_p8 }
  0x31   :  { %3099 = shalt.err (!%p3096_p10)
}
  0x32   :  { %s3100_s21 = scalar_lea.vmem %s3474_s27, 1024  ;;  %p3105_p12 = scmp.lt.s32.totalorder %s3474_s27, %s3474_s27 }
  0x33   :  { %p3101_p11 = scmp.ne.s32.totalorder %s3474_s27, %s3100_s21  ;;  %p3106_p13 = scmp.lt.s32.totalorder %s3100_s21, %s3100_s21 }
  0x35   :  { %p3107_p0 = por %p3106_p13, %p3105_p12 }
  0x37   :  { %p3108_p1 = pnand %p3107_p0, %p3101_p11 }
  0x39   :  { %3111 = shalt.err (!%p3108_p1)
}
  0x3a   :  { %80 = dma.hbm_to_vmem [thread:$0]  %s4051_s0, 1024, %s3474_s27, [#allocation9], %s4037_s1, %s4037_s1, %s4039_s24  }
  0x3b   :  { %s3350_s2 = smov [#allocation11]   ;;  %s3112_s4 = scalar_lea.hbm %s4015_s7, 2048 }
  0x3c   :  { %s102_s26 = sshll.u32 %s3350_s2, 4  ;;  %p3113_p2 = scmp.ne.s32.totalorder %s4015_s7, %s3112_s4  ;;  %s103_s26 = int_to_ptr.vmem [resolvable:$true] %s102_s26 }
  0x3d   :  { %p3116_p3 = scmp.lt.u32.totalorder %s3112_s4, %s4015_s7 }
  0x3f   :  { %p3118_p4 = pnand %p3116_p3, %p3113_p2 }
  0x41   :  { %3121 = shalt.err (!%p3118_p4)
}
  0x42   :  { %s3122_s23 = scalar_lea.vmem %s103_s26, 2048  ;;  %p3127_p6 = scmp.lt.s32.totalorder %s103_s26, %s103_s26 }
  0x43   :  { %p3123_p5 = scmp.ne.s32.totalorder %s103_s26, %s3122_s23  ;;  %p3128_p7 = scmp.lt.s32.totalorder %s3122_s23, %s3122_s23 }
  0x45   :  { %p3129_p8 = por %p3128_p7, %p3127_p6 }
  0x47   :  { %p3130_p9 = pnand %p3129_p8, %p3123_p5 }
  0x49   :  { %3133 = shalt.err (!%p3130_p9)
}
  0x4a   :  { %s4041_s27 = smov 64   ;;  %s3352_s0 = smov 4  }
  0x4b   :  { %108 = dma.hbm_to_vmem [thread:$0]  %s4015_s7, 2048, %s103_s26, [#allocation12], %s4041_s27, %s4041_s27, %s3352_s0  }
  0x4c   :  { %s3353_s2 = smov [#allocation14]   ;;  %s3354_s28 = smov [#allocation17]  }
  0x4d   :  { %s130_s3 = sshll.u32 %s3353_s2, 4  ;;  %s162_s4 = sshll.u32 %s3354_s28, 4  ;;  %s131_s3 = int_to_ptr.vmem [resolvable:$true] %s130_s3  ;;  %s163_s4 = int_to_ptr.vmem [resolvable:$true] %s162_s4 }
  0x4e   :  { %s3134_s5 = scalar_lea.hbm %s4019_s11, 2048 }
  0x4f   :  { %p3135_p10 = scmp.ne.s32.totalorder %s4019_s11, %s3134_s5  ;;  %p3138_p11 = scmp.lt.u32.totalorder %s3134_s5, %s4019_s11 }
  0x51   :  { %p3140_p12 = pnand %p3138_p11, %p3135_p10 }
  0x53   :  { %3143 = shalt.err (!%p3140_p12)
}
  0x54   :  { %s3144_s7 = scalar_lea.vmem %s131_s3, 2048  ;;  %p3149_p0 = scmp.lt.s32.totalorder %s131_s3, %s131_s3 }
  0x55   :  { %p3145_p13 = scmp.ne.s32.totalorder %s131_s3, %s3144_s7  ;;  %p3150_p1 = scmp.lt.s32.totalorder %s3144_s7, %s3144_s7 }
  0x57   :  { %p3151_p2 = por %p3150_p1, %p3149_p0 }
  0x59   :  { %p3152_p3 = pnand %p3151_p2, %p3145_p13 }
  0x5b   :  { %3155 = shalt.err (!%p3152_p3)
}
  0x5c   :  { %136 = dma.hbm_to_vmem [thread:$0]  %s4019_s11, 2048, %s131_s3, [#allocation15], %s4041_s27, %s4041_s27, %s3352_s0  }
  0x5d   :  { %s3156_s24 = scalar_lea.hbm %s4025_s17, 2048 }
  0x5e   :  { %p3157_p4 = scmp.ne.s32.totalorder %s4025_s17, %s3156_s24  ;;  %p3160_p5 = scmp.lt.u32.totalorder %s3156_s24, %s4025_s17 }
  0x60   :  { %p3162_p6 = pnand %p3160_p5, %p3157_p4 }
  0x62   :  { %3165 = shalt.err (!%p3162_p6)
}
  0x63   :  { %s3166_s5 = scalar_lea.vmem %s163_s4, 2048  ;;  %p3171_p8 = scmp.lt.s32.totalorder %s163_s4, %s163_s4 }
  0x64   :  { %p3167_p7 = scmp.ne.s32.totalorder %s163_s4, %s3166_s5  ;;  %p3172_p9 = scmp.lt.s32.totalorder %s3166_s5, %s3166_s5 }
  0x66   :  { %p3173_p10 = por %p3172_p9, %p3171_p8 }
  0x68   :  { %p3174_p11 = pnand %p3173_p10, %p3167_p7 }
  0x6a   :  { %3177 = shalt.err (!%p3174_p11)
}
  0x6b   :  { %168 = dma.hbm_to_vmem [thread:$0]  %s4025_s17, 2048, %s163_s4, [#allocation18], %s4041_s27, %s4041_s27, %s3352_s0  }
  0x6c   :  { %s3355_s22 = smov [#allocation2]   ;;  %s3356_s7 = smov [#allocation7]  }
  0x6d   :  { %s38_s23 = sshll.u32 %s3355_s22, 4  ;;  %s62_s26 = sshll.u32 %s3356_s7, 4  ;;  %s39_s23 = int_to_ptr.vmem [resolvable:$true] %s38_s23  ;;  %s63_s26 = int_to_ptr.vmem [resolvable:$true] %s62_s26 }
  0x6e   :  { %s4052_s1 = sld [smem:[#allocation28_spill]] }
  0x74   :  { %s3178_s24 = scalar_lea.hbm %s4052_s1, 256 }
  0x75   :  { %p3179_p12 = scmp.ne.s32.totalorder %s4052_s1, %s3178_s24  ;;  %p3182_p13 = scmp.lt.u32.totalorder %s3178_s24, %s4052_s1 }
  0x77   :  { %p3184_p0 = pnand %p3182_p13, %p3179_p12 }
  0x79   :  { %3187 = shalt.err (!%p3184_p0)
}
  0x7a   :  { %s3188_s17 = scalar_lea.vmem %s39_s23, 256  ;;  %p3193_p2 = scmp.lt.s32.totalorder %s39_s23, %s39_s23 }
  0x7b   :  { %p3189_p1 = scmp.ne.s32.totalorder %s39_s23, %s3188_s17  ;;  %p3194_p3 = scmp.lt.s32.totalorder %s3188_s17, %s3188_s17 }
  0x7d   :  { %p3195_p4 = por %p3194_p3, %p3193_p2 }
  0x7f   :  { %p3196_p5 = pnand %p3195_p4, %p3189_p1 }
  0x81   :  { %3199 = shalt.err (!%p3196_p5)
}
  0x82   :  { %s4053_s4 = smov 8   ;;  %s4054_s5 = smov 128  }
  0x83   :  { %44 = dma.hbm_to_vmem [thread:$0]  %s4052_s1, 256, %s39_s23, [#allocation3], %s4054_s5, %s4054_s5, %s4053_s4  }
  0x84   :  { %s4055_s25 = sld [smem:[#allocation30_spill]] }
  0x8a   :  { %s3200_s29 = scalar_lea.hbm %s4055_s25, 1024 }
  0x8b   :  { %p3201_p6 = scmp.ne.s32.totalorder %s4055_s25, %s3200_s29  ;;  %p3204_p7 = scmp.lt.u32.totalorder %s3200_s29, %s4055_s25 }
  0x8d   :  { %p3206_p8 = pnand %p3204_p7, %p3201_p6 }
  0x8f   :  { %3209 = shalt.err (!%p3206_p8)
}
  0x90   :  { %s3210_s21 = scalar_lea.vmem %s63_s26, 1024  ;;  %p3215_p10 = scmp.lt.s32.totalorder %s63_s26, %s63_s26 }
  0x91   :  { %p3211_p9 = scmp.ne.s32.totalorder %s63_s26, %s3210_s21  ;;  %p3216_p11 = scmp.lt.s32.totalorder %s3210_s21, %s3210_s21 }
  0x93   :  { %p3217_p12 = por %p3216_p11, %p3215_p10 }
  0x95   :  { %p3218_p13 = pnand %p3217_p12, %p3211_p9 }
  0x97   :  { %3221 = shalt.err (!%p3218_p13)
}
  0x98   :  { %68 = dma.hbm_to_vmem [thread:$0]  %s4055_s25, 1024, %s63_s26, [#allocation6], %s4054_s5, %s4054_s5, %s4053_s4  }
  0x99   :  { %s3357_s17 = smov [#allocation10]   ;;  %s3358_s3 = smov [#allocation13]  }
  0x9a   :  { %s86_s11 = sshll.u32 %s3357_s17, 4  ;;  %s116_s22 = sshll.u32 %s3358_s3, 4  ;;  %s87_s11 = int_to_ptr.vmem [resolvable:$true] %s86_s11  ;;  %s117_s22 = int_to_ptr.vmem [resolvable:$true] %s116_s22 }
  0x9b   :  { %s4056_s24 = sld [smem:[#allocation32_spill]] }
  0xa1   :  { %s3222_s2 = scalar_lea.hbm %s4056_s24, 256 }
  0xa2   :  { %p3223_p0 = scmp.ne.s32.totalorder %s4056_s24, %s3222_s2  ;;  %p3226_p1 = scmp.lt.u32.totalorder %s3222_s2, %s4056_s24 }
  0xa4   :  { %p3228_p2 = pnand %p3226_p1, %p3223_p0 }
  0xa6   :  { %3231 = shalt.err (!%p3228_p2)
}
  0xa7   :  { %s3232_s26 = scalar_lea.vmem %s87_s11, 256  ;;  %p3237_p4 = scmp.lt.s32.totalorder %s87_s11, %s87_s11 }
  0xa8   :  { %p3233_p3 = scmp.ne.s32.totalorder %s87_s11, %s3232_s26  ;;  %p3238_p5 = scmp.lt.s32.totalorder %s3232_s26, %s3232_s26 }
  0xaa   :  { %p3239_p6 = por %p3238_p5, %p3237_p4 }
  0xac   :  { %p3240_p7 = pnand %p3239_p6, %p3233_p3 }
  0xae   :  { %3243 = shalt.err (!%p3240_p7)
}
  0xaf   :  { %92 = dma.hbm_to_vmem [thread:$0]  %s4056_s24, 256, %s87_s11, [#allocation9], %s4054_s5, %s4054_s5, %s4053_s4  }
  0xb0   :  { %s3244_s17 = scalar_lea.hbm %s4017_s9, 2048 }
  0xb1   :  { %p3245_p8 = scmp.ne.s32.totalorder %s4017_s9, %s3244_s17  ;;  %p3248_p9 = scmp.lt.u32.totalorder %s3244_s17, %s4017_s9 }
  0xb3   :  { %p3250_p10 = pnand %p3248_p9, %p3245_p8 }
  0xb5   :  { %3253 = shalt.err (!%p3250_p10)
}
  0xb6   :  { %s3254_s28 = scalar_lea.vmem %s117_s22, 2048  ;;  %p3259_p12 = scmp.lt.s32.totalorder %s117_s22, %s117_s22 }
  0xb7   :  { %p3255_p11 = scmp.ne.s32.totalorder %s117_s22, %s3254_s28  ;;  %p3260_p13 = scmp.lt.s32.totalorder %s3254_s28, %s3254_s28 }
  0xb9   :  { %p3261_p0 = por %p3260_p13, %p3259_p12 }
  0xbb   :  { %p3262_p1 = pnand %p3261_p0, %p3255_p11 }
  0xbd   :  { %3265 = shalt.err (!%p3262_p1)
}
  0xbe   :  { %s4057_s11 = smov 64   ;;  %s3359_s21 = smov [#allocation16]  }
  0xbf   :  { %122 = dma.hbm_to_vmem [thread:$0]  %s4017_s9, 2048, %s117_s22, [#allocation12], %s4057_s11, %s4057_s11, %s3352_s0  }
  0xc0   :  { %s144_s26 = sshll.u32 %s3359_s21, 4  ;;  %s3360_s25 = smov [#allocation19]   ;;  %s145_s26 = int_to_ptr.vmem [resolvable:$true] %s144_s26 }
  0xc1   :  { %s176_s23 = sshll.u32 %s3360_s25, 4  ;;  %s3266_s17 = scalar_lea.hbm %s4021_s13, 2048  ;;  %s177_s23 = int_to_ptr.vmem [resolvable:$true] %s176_s23 }
  0xc2   :  { %p3267_p2 = scmp.ne.s32.totalorder %s4021_s13, %s3266_s17  ;;  %p3270_p3 = scmp.lt.u32.totalorder %s3266_s17, %s4021_s13 }
  0xc4   :  { %p3272_p4 = pnand %p3270_p3, %p3267_p2 }
  0xc6   :  { %3275 = shalt.err (!%p3272_p4)
}
  0xc7   :  { %s3276_s9 = scalar_lea.vmem %s145_s26, 2048  ;;  %p3281_p6 = scmp.lt.s32.totalorder %s145_s26, %s145_s26 }
  0xc8   :  { %p3277_p5 = scmp.ne.s32.totalorder %s145_s26, %s3276_s9  ;;  %p3282_p7 = scmp.lt.s32.totalorder %s3276_s9, %s3276_s9 }
  0xca   :  { %p3283_p8 = por %p3282_p7, %p3281_p6 }
  0xcc   :  { %p3284_p9 = pnand %p3283_p8, %p3277_p5 }
  0xce   :  { %3287 = shalt.err (!%p3284_p9)
}
  0xcf   :  { %150 = dma.hbm_to_vmem [thread:$0]  %s4021_s13, 2048, %s145_s26, [#allocation15], %s4057_s11, %s4057_s11, %s3352_s0  }
  0xd0   :  { %s3288_s21 = scalar_lea.hbm %s4027_s19, 2048 }
  0xd1   :  { %p3289_p10 = scmp.ne.s32.totalorder %s4027_s19, %s3288_s21  ;;  %p3292_p11 = scmp.lt.u32.totalorder %s3288_s21, %s4027_s19 }
  0xd3   :  { %p3294_p12 = pnand %p3292_p11, %p3289_p10 }
  0xd5   :  { %3297 = shalt.err (!%p3294_p12)
}
  0xd6   :  { %s3298_s3 = scalar_lea.vmem %s177_s23, 2048  ;;  %p3303_p0 = scmp.lt.s32.totalorder %s177_s23, %s177_s23 }
  0xd7   :  { %p3299_p13 = scmp.ne.s32.totalorder %s177_s23, %s3298_s3  ;;  %p3304_p1 = scmp.lt.s32.totalorder %s3298_s3, %s3298_s3 }
  0xd9   :  { %p3305_p2 = por %p3304_p1, %p3303_p0 }
  0xdb   :  { %p3306_p3 = pnand %p3305_p2, %p3299_p13 }
  0xdd   :  { %3309 = shalt.err (!%p3306_p3)
}
  0xde   :  { %182 = dma.hbm_to_vmem [thread:$0]  %s4027_s19, 2048, %s177_s23, [#allocation18], %s4057_s11, %s4057_s11, %s3352_s0  }
  0xdf   :  { %3332 = dma.done.wait [#allocation3], 256  }
  0xe0   :  { %3333 = vsyncadd [#allocation3], 4294967040 }
  0xe1   :  { %3334 = dma.done.wait [#allocation6], 1280  }
  0xe2   :  { %3335 = vsyncadd [#allocation6], 4294966016 }
  0xe3   :  { %3336 = dma.done.wait [#allocation9], 1280  }
  0xe4   :  { %3337 = vsyncadd [#allocation9], 4294966016 }
  0xe5   :  { %3338 = dma.done.wait [#allocation12], 4096  }
  0xe6   :  { %3339 = vsyncadd [#allocation12], 4294963200 }
  0xe7   :  { %3340 = dma.done.wait [#allocation15], 4096  }
  0xe8   :  { %3341 = vsyncadd [#allocation15], 4294963200 }
  0xe9   :  { %3342 = dma.done.wait [#allocation18], 4096  }
  0xea   :  { %3343 = vsyncadd [#allocation18], 4294963200  ;;  %v3646_v0 = vld [vmem:[#allocation2] sm:$0xff]  ;;  %v3648_v1 = vld [vmem:[#allocation2 + $0x8] sm:$0xff]  ;;  %v3361_v5 = vmov 0.0   ;;  %vm3362_vm0 = vmmov 0  }
  0xeb   :  { %243 = vadd.xlane.f32.xlu0 %v3646_v0  ;;  %v2922_v2 = vld [vmem:[#allocation11] sm:$0xff]   ;;  %v2924_v4 = vld [vmem:[#allocation11 + $0x8] sm:$0xff]   ;;  %2546 = vmatprep.subr.bf16.mxu0 %v3361_v5  ;;  %v2926_v19 = vld [vmem:[#allocation11 + $0x10] sm:$0xff]   ;;  %s4058_s11 = sld [smem:[#allocation33_spill]]  ;;  %vm686_vm1 = vcmask 523264   ;;  %s3363_s25 = smov [#allocation20]  }
  0xec   :  { %v2923_v3 = vld [vmem:[#allocation13] sm:$0xff]   ;;  %2566 = vmatprep.subr.bf16.mxu1 %v3361_v5  ;;  %2547 = vmatpush3.bf16.msra.mxu0 %v2922_v2  ;;  %v3661_v13 = vld [vmem:[#allocation5 + $0x8] sm:$0xff]  ;;  %v2927_v20 = vld [vmem:[#allocation13 + $0x10] sm:$0xff]   ;;  %s2245_s1 = sshll.u32 %s3363_s25, 4  ;;  %s2246_s1 = int_to_ptr.vmem [resolvable:$true] %s2245_s1 }
  0xed   :  { %2567 = vmatpush3.bf16.msra.mxu1 %v2923_v3  ;;  %2548 = vmatprep.subr.bf16.mxu0 %v3361_v5  ;;  %v3657_v8 = vld [vmem:[#allocation5] sm:$0xff]  ;;  %v2925_v18 = vld [vmem:[#allocation13 + $0x8] sm:$0xff]   ;;  %v2928_v21 = vld [vmem:[#allocation11 + $0x18] sm:$0xff]   ;;  %s3310_s27 = scalar_lea.vmem %s2246_s1, 256  ;;  %p3315_p5 = scmp.lt.s32.totalorder %s2246_s1, %s2246_s1 }
  0xee   :  { %2568 = vmatprep.subr.bf16.mxu1 %v3361_v5  ;;  %v2929_v22 = vld [vmem:[#allocation13 + $0x18] sm:$0xff]   ;;  %v2930_v23 = vld [vmem:[#allocation11 + $0x20] sm:$0xff]   ;;  %2562 = vmatprep.mubr.msk.bf16.mxu0 %vm3362_vm0, %v3361_v5  ;;  %v2932_v25 = vld [vmem:[#allocation11 + $0x28] sm:$0xff]   ;;  %p3311_p4 = scmp.ne.s32.totalorder %s2246_s1, %s3310_s27  ;;  %p3316_p6 = scmp.lt.s32.totalorder %s3310_s27, %s3310_s27 }
  0xef   :  { %245 = vadd.xlane.f32.xlu0 %v3648_v1  ;;  %v2931_v24 = vld [vmem:[#allocation13 + $0x20] sm:$0xff]   ;;  %2582 = vmatprep.mubr.msk.bf16.mxu1 %vm3362_vm0, %v3361_v5  ;;  %v2933_v26 = vld [vmem:[#allocation13 + $0x28] sm:$0xff]   ;;  %v2934_v27 = vld [vmem:[#allocation11 + $0x30] sm:$0xff]  }
  0xf0   :  { %2549 = vmatpush3.bf16.msra.mxu0 %v2924_v4  ;;  %v2935_v28 = vld [vmem:[#allocation13 + $0x30] sm:$0xff]   ;;  %v2936_v29 = vld [vmem:[#allocation11 + $0x38] sm:$0xff]   ;;  %v2938_v47 = vld [vmem:[#allocation14] sm:$0xff]   ;;  %p3317_p7 = por %p3316_p6, %p3315_p5 }
  0xf1   :  { %2550 = vmatprep.subr.bf16.mxu0 %v3361_v5  ;;  %2569 = vmatpush3.bf16.msra.mxu1 %v2925_v18  ;;  %v2937_v30 = vld [vmem:[#allocation13 + $0x38] sm:$0xff]   ;;  %v2262_v39 = vld [vmem:[%s4058_s11] ss:$0 sm:$0xff]  ;;  %v2939_v49 = vld [vmem:[#allocation14 + $0x8] sm:$0xff]  }
  0xf2   :  { %2570 = vmatprep.subr.bf16.mxu1 %v3361_v5  ;;  %v2263_v43 = vld [vmem:[%s4014_s6] ss:$0 sm:$0xff]  ;;  %v2941_v51 = vld [vmem:[#allocation14 + $0x18] sm:$0xff]   ;;  %v2942_v52 = vld [vmem:[#allocation14 + $0x20] sm:$0xff]   ;;  %p3318_p8 = pnand %p3317_p7, %p3311_p4 }
  0xf3   :  { %v2940_v50 = vld [vmem:[#allocation14 + $0x10] sm:$0xff]   ;;  %v2943_v53 = vld [vmem:[#allocation14 + $0x28] sm:$0xff]   ;;  %v2945_v55 = vld [vmem:[#allocation14 + $0x38] sm:$0xff]  }
  0xf4   :  { %2551 = vmatpush3.bf16.msra.mxu0 %v2926_v19  ;;  %v2944_v54 = vld [vmem:[#allocation14 + $0x30] sm:$0xff]   ;;  %v3710_v2 = vld [vmem:[#allocation7 + $0x10] sm:$0xff] }
  0xf5   :  { %2571 = vmatpush3.bf16.msra.mxu1 %v2927_v20  ;;  %2552 = vmatprep.subr.bf16.mxu0 %v3361_v5  ;;  %v2273_v56 = vld [vmem:[%s4018_s10] ss:$0 sm:$0xff] }
  0xf6   :  { %2572 = vmatprep.subr.bf16.mxu1 %v3361_v5  ;;  %v2264_v59 = vld [vmem:[%s4016_s8] ss:$0 sm:$0xff] }
  0xf7   :  { %v3708_v63 = vld [vmem:[#allocation7] sm:$0xff] }
  0xf8   :  { %2553 = vmatpush3.bf16.msra.mxu0 %v2928_v21  ;;  %v3712_v3 = vld [vmem:[#allocation7 + $0x20] sm:$0xff] }
  0xf9   :  { %2573 = vmatpush3.bf16.msra.mxu1 %v2929_v22  ;;  %2554 = vmatprep.subr.bf16.mxu0 %v3361_v5 }
  0xfa   :  { %2574 = vmatprep.subr.bf16.mxu1 %v3361_v5 }
  0xfc   :  { %2555 = vmatpush3.bf16.msra.mxu0 %v2930_v23 }
  0xfd   :  { %2575 = vmatpush3.bf16.msra.mxu1 %v2931_v24  ;;  %2556 = vmatprep.subr.bf16.mxu0 %v3361_v5 }
  0xfe   :  { %2576 = vmatprep.subr.bf16.mxu1 %v3361_v5 }
 0x100   :  { %2557 = vmatpush3.bf16.msra.mxu0 %v2932_v25 }
 0x101   :  { %2577 = vmatpush3.bf16.msra.mxu1 %v2933_v26  ;;  %2558 = vmatprep.subr.bf16.mxu0 %v3361_v5 }
 0x102   :  { %2578 = vmatprep.subr.bf16.mxu1 %v3361_v5 }
 0x104   :  { %2559 = vmatpush3.bf16.msra.mxu0 %v2934_v27 }
 0x105   :  { %2579 = vmatpush3.bf16.msra.mxu1 %v2935_v28  ;;  %2560 = vmatprep.subr.bf16.mxu0 %v3361_v5 }
 0x106   :  { %2580 = vmatprep.subr.bf16.mxu1 %v3361_v5 }
 0x108   :  { %2561 = vmatpush3.bf16.msra.mxu0 %v2936_v29 }
 0x109   :  { %2581 = vmatpush3.bf16.msra.mxu1 %v2937_v30  ;;  %2586 = vmatprep.subr.bf16.mxu0 %v3361_v5 }
 0x10a   :  { %2606 = vmatprep.subr.bf16.mxu1 %v3361_v5 }
 0x178   :  { %v244_v6 = vpop.xlane.xlu0 %243 }
 0x179   :  { %v247_v7 = vmul.f32 0.03125, %v244_v6 }
 0x17b   :  { %v249_v9 = vsub.f32 %v3646_v0, %v247_v7  ;;  %v3714_v7 = vld [vmem:[#allocation7 + $0x8] sm:$0xff] }
 0x17c   :  { %v246_v10 = vpop.xlane.xlu0 %245 }
 0x17d   :  { %v248_v11 = vmul.f32 0.03125, %v246_v10  ;;  %v251_v12 = vmul.f32 %v249_v9, %v3657_v8  ;;  %v3716_v9 = vld [vmem:[#allocation7 + $0x18] sm:$0xff]  ;;  %v3718_v10 = vld [vmem:[#allocation7 + $0x28] sm:$0xff] }
 0x17f   :  { %v250_v14 = vsub.f32 %v3648_v1, %v248_v11  ;;  %v253_v15 = vmul.f32 %v251_v12, %v251_v12 }
 0x181   :  { %255 = vadd.xlane.f32.xlu1 %v253_v15  ;;  %v252_v16 = vmul.f32 %v250_v14, %v3661_v13  ;;  %v3720_v15 = vld [vmem:[#allocation7 + $0x30] sm:$0xff] }
 0x183   :  { %v254_v17 = vmul.f32 %v252_v16, %v252_v16 }
 0x185   :  { %257 = vadd.xlane.f32.xlu1 %v254_v17  ;;  %v3722_v17 = vld [vmem:[#allocation7 + $0x38] sm:$0xff] }
 0x20e   :  { %v256_v31 = vpop.xlane.xlu1 %255 }
 0x20f   :  { %v259_v32 = vmul.f32 0.03125, %v256_v31 }
 0x211   :  { %v261_v33 = vadd.f32 1e-05, %v259_v32  ;;  %v2282_v32 = vld [vmem:[%s4020_s12] ss:$0 sm:$0xff] }
 0x212   :  { %v258_v34 = vpop.xlane.xlu1 %257 }
 0x213   :  { %3018 = vrsqrt.f32 %v261_v33  ;;  %v260_v35 = vmul.f32 0.03125, %v258_v34 }
 0x215   :  { %v262_v36 = vadd.f32 1e-05, %v260_v35 }
 0x217   :  { %3020 = vrsqrt.f32 %v262_v36 }
 0x21d   :  { %v3019_v37 = vpop.eup %3018 }
 0x21e   :  { %v265_v38 = vmul.f32 %v3019_v37, %v251_v12 }
 0x220   :  { %v273_v42 = vmul.f32 %v2262_v39, %v265_v38 }
 0x221   :  { %v3021_v40 = vpop.eup %3020 }
 0x222   :  { %v266_v41 = vmul.f32 %v3021_v40, %v252_v16  ;;  %v281_v45 = vadd.f32 %v2263_v43, %v273_v42 }
 0x224   :  { %v274_v44 = vmul.f32 %v2262_v39, %v266_v41 }
 0x226   :  { %v282_v46 = vadd.f32 %v2263_v43, %v274_v44 }
 0x228   :  { %v283_v48 = vpack.c.bf16 %v282_v46, %v281_v45 }
 0x22a   :  { %2563 = vmatmul.mubr.bf16.vlgmr.msra.gmra.mrb[0].mxu0 %v283_v48  ;;  %2583 = vmatmul.mubr.bf16.vlgmr.msra.gmra.mrb[0].mxu1 %v283_v48 }
 0x22b   :  { %2587 = vmatpush3.bf16.msra.mxu0 %v2938_v47  ;;  %2602 = vmatprep.mubr.msk.bf16.mxu0 %vm3362_vm0, %v3361_v5 }
 0x22c   :  { %2588 = vmatprep.subr.bf16.mxu0 %v3361_v5  ;;  %2614 = vmatprep.mubr.msk.bf16.mxu1 %vm3362_vm0, %v3361_v5 }
 0x22f   :  { %2589 = vmatpush3.bf16.msra.mxu0 %v2939_v49 }
 0x230   :  { %2590 = vmatprep.subr.bf16.mxu0 %v3361_v5 }
 0x233   :  { %2591 = vmatpush3.bf16.msra.mxu0 %v2940_v50 }
 0x234   :  { %2592 = vmatprep.subr.bf16.mxu0 %v3361_v5 }
 0x237   :  { %2593 = vmatpush3.bf16.msra.mxu0 %v2941_v51  ;;  %v3749_v51 = vld [vmem:[#allocation10] sm:$0xff] }
 0x238   :  { %2594 = vmatprep.subr.bf16.mxu0 %v3361_v5 }
 0x23b   :  { %2595 = vmatpush3.bf16.msra.mxu0 %v2942_v52 }
 0x23c   :  { %2596 = vmatprep.subr.bf16.mxu0 %v3361_v5 }
 0x23f   :  { %2597 = vmatpush3.bf16.msra.mxu0 %v2943_v53  ;;  %v3751_v53 = vld [vmem:[#allocation10 + $0x8] sm:$0xff] }
 0x240   :  { %2598 = vmatprep.subr.bf16.mxu0 %v3361_v5 }
 0x243   :  { %2599 = vmatpush3.bf16.msra.mxu0 %v2944_v54 }
 0x244   :  { %2600 = vmatprep.subr.bf16.mxu0 %v3361_v5 }
 0x247   :  { %2601 = vmatpush3.bf16.msra.mxu0 %v2945_v55 }
 0x248   :  { %2649 = vmatprep.subr.bf16.mxu0 %v3361_v5 }
 0x24a   :  { %2603 = vmatmul.mubr.bf16.vlgmr.msra.gmra.mrb[4].mxu0 %v283_v48 }
 0x24b   :  { %2665 = vmatprep.mubr.msk.bf16.mxu0 %vm3362_vm0, %v3361_v5 }
 0x2fd   :  { %v389_v57 = vpop.f32.mrb[0].mxu0  ;;  %v501_v58 = vpop.f32.mrb[0].mxu1 }
 0x2fe   :  { %v502_v60 = vadd.f32 %v2273_v56, %v501_v58  ;;  %v2564_v61 = vpop.f32.mrb[1].mxu0  ;;  %v2584_v62 = vpop.f32.mrb[1].mxu1  ;;  %v390_v14 = vadd.f32 %v2264_v59, %v389_v57 }
 0x2ff   :  { %v392_v4 = vpop.f32.mrb[2].mxu0  ;;  %v504_v6 = vpop.f32.mrb[2].mxu1  ;;  %v229_v61 = vld [vmem:[#allocation8] sm:$0xff]  ;;  %v230_v62 = vld [vmem:[#allocation8 + $0x8] sm:$0xff] }
 0x300   :  { %v2565_v11 = vpop.f32.mrb[3].mxu0  ;;  %v2585_v12 = vpop.f32.mrb[3].mxu1  ;;  %v393_v16 = vadd.f32 %v2264_v59, %v392_v4  ;;  %v505_v18 = vadd.f32 %v2273_v56, %v504_v6  ;;  %v620_v19 = vmul.f32 %v502_v60, %v3708_v63  ;;  %v622_v20 = vmul.f32 %v502_v60, %v3710_v2  ;;  %v231_v6 = vld [vmem:[#allocation8 + $0x10] sm:$0xff] }
 0x301   :  { %v624_v21 = vmul.f32 %v502_v60, %v3712_v3  ;;  %v626_v26 = vmul.f32 %v502_v60, %v3720_v15  ;;  %v3757_v4 = vpack.c.bf16 %v230_v62, %v229_v61  ;;  %v232_v11 = vld [vmem:[#allocation8 + $0x18] sm:$0xff] }
 0x302   :  { %v644_v22 = vpack.c.bf16 %v393_v16, %v390_v14  ;;  %v621_v23 = vmul.f32 %v505_v18, %v3714_v7  ;;  %v623_v24 = vmul.f32 %v505_v18, %v3716_v9  ;;  %v625_v25 = vmul.f32 %v505_v18, %v3718_v10  ;;  %v233_v14 = vld [vmem:[#allocation8 + $0x20] sm:$0xff]  ;;  %v234_v16 = vld [vmem:[#allocation8 + $0x28] sm:$0xff] }
 0x303   :  { %v627_v27 = vmul.f32 %v505_v18, %v3722_v17  ;;  %v3761_v12 = vpack.c.bf16 %v232_v11, %v231_v6  ;;  %v235_v18 = vld [vmem:[#allocation8 + $0x30] sm:$0xff]  ;;  %v2955_v11 = vld [vmem:[#allocation17 + $0x8] sm:$0xff]  }
 0x304   :  { %v628_v28 = vpack.c.bf16 %v621_v23, %v620_v19  ;;  %v629_v29 = vpack.c.bf16 %v623_v24, %v622_v20  ;;  %v630_v30 = vpack.c.bf16 %v625_v25, %v624_v21  ;;  %v3765_v19 = vpack.c.bf16 %v234_v16, %v233_v14  ;;  %v236_v20 = vld [vmem:[#allocation8 + $0x38] sm:$0xff]  ;;  %v2954_v6 = vld [vmem:[#allocation17] sm:$0xff]  }
 0x305   :  { %v631_v31 = vpack.c.bf16 %v627_v27, %v626_v26  ;;  %v3767_v21 = vpack.c.bf16 %v236_v20, %v235_v18 }
 0x306   :  { %2607 = vmatpush3.bf16.xpose.msra.mxu1 %v628_v28 }
 0x307   :  { %2608 = vmatprep.subr.bf16.mxu1 %v3361_v5 }
 0x30e   :  { %2609 = vmatpush3.bf16.xpose.msra.mxu1 %v629_v29 }
 0x30f   :  { %2610 = vmatprep.subr.bf16.mxu1 %v3361_v5 }
 0x316   :  { %2611 = vmatpush3.bf16.xpose.msra.mxu1 %v630_v30  ;;  %v2946_v30 = vld [vmem:[#allocation16] sm:$0xff]  }
 0x317   :  { %2612 = vmatprep.subr.bf16.mxu1 %v3361_v5  ;;  %2650 = vmatpush3.bf16.msra.mxu0 %v2946_v30  ;;  %v2960_v30 = vld [vmem:[#allocation17 + $0x30] sm:$0xff]  }
 0x318   :  { %2651 = vmatprep.subr.bf16.mxu0 %v3361_v5 }
 0x31d   :  { %v613_v33 = vpop.f32.mrb[4].mxu0 }
 0x31e   :  { %v614_v34 = vadd.f32 %v2282_v32, %v613_v33  ;;  %v2604_v35 = vpop.f32.mrb[5].mxu0  ;;  %2613 = vmatpush3.bf16.xpose.msra.mxu1 %v631_v31  ;;  %v2947_v31 = vld [vmem:[#allocation16 + $0x8] sm:$0xff]   ;;  %v2949_v33 = vld [vmem:[#allocation16 + $0x18] sm:$0xff]  }
 0x31f   :  { %v616_v36 = vpop.f32.mrb[6].mxu0  ;;  %2873 = vmatprep.subr.bf16.mxu1 %v3757_v4  ;;  %2652 = vmatpush3.bf16.msra.mxu0 %v2947_v31  ;;  %v2951_v35 = vld [vmem:[#allocation16 + $0x28] sm:$0xff]   ;;  %v2961_v31 = vld [vmem:[#allocation17 + $0x38] sm:$0xff]  }
 0x320   :  { %v2605_v37 = vpop.f32.mrb[7].mxu0  ;;  %v617_v38 = vadd.f32 %v2282_v32, %v616_v36  ;;  %v632_v39 = vmul.f32 %v614_v34, %v3708_v63  ;;  %v634_v40 = vmul.f32 %v614_v34, %v3710_v2  ;;  %v636_v41 = vmul.f32 %v614_v34, %v3712_v3  ;;  %v2948_v32 = vld [vmem:[#allocation16 + $0x10] sm:$0xff]   ;;  %2653 = vmatprep.subr.bf16.mxu0 %v3361_v5 }
 0x321   :  { %v3742_v42 = vmul.f32 %v614_v34, %v3720_v15  ;;  %v2950_v34 = vld [vmem:[#allocation16 + $0x20] sm:$0xff]   ;;  %v2952_v36 = vld [vmem:[#allocation16 + $0x30] sm:$0xff]  }
 0x322   :  { %v633_v43 = vmul.f32 %v617_v38, %v3714_v7  ;;  %v635_v44 = vmul.f32 %v617_v38, %v3716_v9  ;;  %v637_v45 = vmul.f32 %v617_v38, %v3718_v10  ;;  %v639_v46 = vmul.f32 %v617_v38, %v3722_v17 }
 0x323   :  { %2654 = vmatpush3.bf16.msra.mxu0 %v2948_v32 }
 0x324   :  { %v640_v47 = vpack.c.bf16 %v633_v43, %v632_v39  ;;  %v641_v48 = vpack.c.bf16 %v635_v44, %v634_v40  ;;  %v642_v49 = vpack.c.bf16 %v637_v45, %v636_v41  ;;  %v643_v50 = vpack.c.bf16 %v639_v46, %v3742_v42  ;;  %2655 = vmatprep.subr.bf16.mxu0 %v3361_v5  ;;  %v2953_v46 = vld [vmem:[#allocation16 + $0x38] sm:$0xff]  }
 0x325   :  { %2615 = vmatmul.mubr.bf16.vlgmr.msra.gmra.mrb[4].mxu1 %v644_v22 }
 0x326   :  { %2875 = vmatpush3.bf16.msra.mxu1 %v3757_v4 }
 0x327   :  { %2877 = vmatprep.subr.bf16.mxu1 %v3761_v12  ;;  %2656 = vmatpush3.bf16.msra.mxu0 %v2949_v33 }
 0x328   :  { %2657 = vmatprep.subr.bf16.mxu0 %v3361_v5 }
 0x32a   :  { %2879 = vmatpush3.bf16.msra.mxu1 %v3761_v12 }
 0x32b   :  { %2881 = vmatprep.subr.bf16.mxu1 %v3765_v19  ;;  %2658 = vmatpush3.bf16.msra.mxu0 %v2950_v34 }
 0x32c   :  { %2659 = vmatprep.subr.bf16.mxu0 %v3361_v5 }
 0x32e   :  { %2883 = vmatpush3.bf16.msra.mxu1 %v3765_v19 }
 0x32f   :  { %2885 = vmatprep.subr.bf16.mxu1 %v3767_v21  ;;  %2660 = vmatpush3.bf16.msra.mxu0 %v2951_v35 }
 0x330   :  { %2661 = vmatprep.subr.bf16.mxu0 %v3361_v5 }
 0x332   :  { %2887 = vmatpush3.bf16.msra.mxu1 %v3767_v21 }
 0x333   :  { %2637 = vmatprep.subr.bf16.mxu1 %v3361_v5  ;;  %2662 = vmatpush3.bf16.msra.mxu0 %v2952_v36 }
 0x334   :  { %2663 = vmatprep.subr.bf16.mxu0 %v3361_v5 }
 0x337   :  { %2664 = vmatpush3.bf16.msra.mxu0 %v2953_v46 }
 0x338   :  { %2689 = vmatprep.subr.bf16.mxu0 %v3361_v5 }
 0x3f8   :  { %v679_v52 = vpop.f32.mrb[4].mxu1 }
 0x3f9   :  { %v680_v54 = vadd.f32 %v679_v52, %v3749_v51  ;;  %v2616_v55 = vpop.f32.mrb[5].mxu1 }
 0x3fa   :  { %v682_v56 = vpop.f32.mrb[6].mxu1 }
 0x3fb   :  { %v683_v57 = vadd.f32 %v682_v56, %v3751_v53  ;;  %v2617_v58 = vpop.f32.mrb[7].mxu1  ;;  %v687_v59 = vsel %vm686_vm1, %v680_v54, -inf }
 0x3fc   :  { %688 = vmax.xlane.f32.xlu0 %v687_v59 }
 0x3fd   :  { %v690_v60 = vsel %vm686_vm1, %v683_v57, -inf }
 0x3fe   :  { %691 = vmax.xlane.f32.xlu1 %v690_v60 }
 0x489   :  { %v689_v22 = vpop.xlane.xlu0 %688 }
 0x48a   :  { %v693_v23 = vsub.f32 %v680_v54, %v689_v22  ;;  %v2294_v54 = vld [vmem:[%s4022_s14] ss:$0 sm:$0xff] }
 0x48b   :  { %v692_v24 = vpop.xlane.xlu1 %691 }
 0x48c   :  { %v695_v25 = vmul.f32 1.442695, %v693_v23  ;;  %v694_v26 = vsub.f32 %v683_v57, %v692_v24 }
 0x48e   :  { %3022 = vpow2.f32 %v695_v25  ;;  %v697_v27 = vmul.f32 1.442695, %v694_v26  ;;  %v2956_v26 = vld [vmem:[#allocation17 + $0x10] sm:$0xff]  }
 0x490   :  { %3024 = vpow2.f32 %v697_v27  ;;  %v2957_v27 = vld [vmem:[#allocation17 + $0x18] sm:$0xff]  }
 0x498   :  { %v3023_v28 = vpop.eup %3022 }
 0x499   :  { %2634 = vmatprep.mubr.msk.f32.mxu1 %vm686_vm1, %v3023_v28 }
 0x49a   :  { %v3025_v29 = vpop.eup %3024 }
 0x49b   :  { %2635 = vmatmul.mubr.msk.f32.vlgmr.msra.gmra.mrb[8].mxu1 %vm686_vm1, %v3025_v29 }
 0x49c   :  { %2638 = vmatpush3.bf16.msra.mxu1 %v640_v47  ;;  %2645 = vmatprep.mubr.msk.bf16.mxu1 %vm3362_vm0, %v3361_v5 }
 0x49d   :  { %2639 = vmatprep.subr.bf16.mxu1 %v3361_v5 }
 0x4a0   :  { %2640 = vmatpush3.bf16.msra.mxu1 %v641_v48 }
 0x4a1   :  { %2641 = vmatprep.subr.bf16.mxu1 %v3361_v5 }
 0x4a4   :  { %2642 = vmatpush3.bf16.msra.mxu1 %v642_v49 }
 0x4a5   :  { %2643 = vmatprep.subr.bf16.mxu1 %v3361_v5 }
 0x4a8   :  { %2644 = vmatpush3.bf16.msra.mxu1 %v643_v50 }
 0x4a9   :  { %2669 = vmatprep.subr.bf16.mxu1 %v3361_v5 }
 0x56e   :  { %v2636_v37 = vpop.f32.mrb[8].mxu1 }
 0x56f   :  { %v781_v38 = vmax.f32 %v2636_v37, 1e-30  ;;  %v771_v39 = vpop.f32.mrb[9].mxu1 }
 0x570   :  { %v780_v40 = vmax.f32 %v771_v39, 1e-30  ;;  %v2303_v39 = vld [vmem:[%s4023_s15] ss:$0 sm:$0xff] }
 0x571   :  { %3026 = vrcp.f32 %v781_v38 }
 0x572   :  { %3028 = vrcp.f32 %v780_v40 }
 0x57b   :  { %v3027_v41 = vpop.eup %3026 }
 0x57c   :  { %v3029_v42 = vpop.eup %3028  ;;  %v785_v43 = vmul.f32 %v3027_v41, %v3025_v29  ;;  %v2959_v29 = vld [vmem:[#allocation17 + $0x28] sm:$0xff]  }
 0x57d   :  { %v784_v44 = vmul.f32 %v3029_v42, %v3023_v28  ;;  %v2958_v28 = vld [vmem:[#allocation17 + $0x20] sm:$0xff]  }
 0x57f   :  { %v786_v45 = vpack.c.bf16 %v785_v43, %v784_v44  ;;  %v2304_v44 = vld [vmem:[%s4024_s16] ss:$0 sm:$0xff] }
 0x581   :  { %2646 = vmatmul.mubr.msk.bf16.vlgmr.msra.gmra.mrb[12].mxu1 %vm686_vm1, %v786_v45 }
 0x582   :  { %2685 = vmatprep.mubr.msk.bf16.mxu1 %vm3362_vm0, %v3361_v5  ;;  %2670 = vmatpush3.bf16.msra.mxu1 %v2954_v6 }
 0x583   :  { %2671 = vmatprep.subr.bf16.mxu1 %v3361_v5 }
 0x586   :  { %2672 = vmatpush3.bf16.msra.mxu1 %v2955_v11 }
 0x587   :  { %2673 = vmatprep.subr.bf16.mxu1 %v3361_v5 }
 0x58a   :  { %2674 = vmatpush3.bf16.msra.mxu1 %v2956_v26 }
 0x58b   :  { %2675 = vmatprep.subr.bf16.mxu1 %v3361_v5 }
 0x58e   :  { %2676 = vmatpush3.bf16.msra.mxu1 %v2957_v27 }
 0x58f   :  { %2677 = vmatprep.subr.bf16.mxu1 %v3361_v5 }
 0x592   :  { %2678 = vmatpush3.bf16.msra.mxu1 %v2958_v28 }
 0x593   :  { %2679 = vmatprep.subr.bf16.mxu1 %v3361_v5 }
 0x596   :  { %2680 = vmatpush3.bf16.msra.mxu1 %v2959_v29 }
 0x597   :  { %2681 = vmatprep.subr.bf16.mxu1 %v3361_v5 }
 0x59a   :  { %2682 = vmatpush3.bf16.msra.mxu1 %v2960_v30 }
 0x59b   :  { %2683 = vmatprep.subr.bf16.mxu1 %v3361_v5 }
 0x59e   :  { %2684 = vmatpush3.bf16.msra.mxu1 %v2961_v31 }
 0x59f   :  { %2709 = vmatprep.subr.bf16.mxu1 %v3361_v5 }
 0x654   :  { %v824_v47 = vpop.f32.mrb[12].mxu1 }
 0x655   :  { %v2647_v48 = vpop.f32.mrb[13].mxu1 }
 0x656   :  { %v827_v49 = vpop.f32.mrb[14].mxu1 }
 0x657   :  { %v831_v50 = vpack.c.bf16 %v827_v49, %v824_v47  ;;  %v2648_v52 = vpop.f32.mrb[15].mxu1  ;;  %v2962_v49 = vld [vmem:[#allocation19] sm:$0xff]  }
 0x658   :  { %v2964_v52 = vld [vmem:[#allocation19 + $0x10] sm:$0xff]  }
 0x659   :  { %2666 = vmatmul.mubr.bf16.vlgmr.msra.gmra.mrb[8].mxu0 %v831_v50  ;;  %v2963_v50 = vld [vmem:[#allocation19 + $0x8] sm:$0xff]  }
 0x65a   :  { %2705 = vmatprep.mubr.msk.bf16.mxu0 %vm3362_vm0, %v3361_v5  ;;  %2690 = vmatpush3.bf16.msra.mxu0 %v2962_v49 }
 0x65b   :  { %2691 = vmatprep.subr.bf16.mxu0 %v3361_v5 }
 0x65e   :  { %2692 = vmatpush3.bf16.msra.mxu0 %v2963_v50 }
 0x65f   :  { %2693 = vmatprep.subr.bf16.mxu0 %v3361_v5 }
 0x662   :  { %2694 = vmatpush3.bf16.msra.mxu0 %v2964_v52 }
 0x663   :  { %2695 = vmatprep.subr.bf16.mxu0 %v3361_v5 }
 0x72c   :  { %v937_v55 = vpop.f32.mrb[8].mxu0 }
 0x72d   :  { %v938_v56 = vadd.f32 %v2294_v54, %v937_v55  ;;  %v2667_v57 = vpop.f32.mrb[9].mxu0  ;;  %v2966_v55 = vld [vmem:[#allocation19 + $0x20] sm:$0xff]  }
 0x72e   :  { %v940_v58 = vpop.f32.mrb[10].mxu0  ;;  %v2968_v57 = vld [vmem:[#allocation19 + $0x30] sm:$0xff]  }
 0x72f   :  { %v3799_v59 = vadd.f32 %v938_v56, %v3646_v0  ;;  %v941_v60 = vadd.f32 %v2294_v54, %v940_v58  ;;  %v2668_v61 = vpop.f32.mrb[11].mxu0  ;;  %v2965_v54 = vld [vmem:[#allocation19 + $0x18] sm:$0xff]   ;;  %v2967_v56 = vld [vmem:[#allocation19 + $0x28] sm:$0xff]  }
 0x730   :  { %2696 = vmatpush3.bf16.msra.mxu0 %v2965_v54  ;;  %v2969_v58 = vld [vmem:[#allocation19 + $0x38] sm:$0xff]  }
 0x731   :  { %v3802_v62 = vadd.f32 %v941_v60, %v3648_v1  ;;  %948 = vadd.xlane.f32.xlu0 %v3799_v59  ;;  %2697 = vmatprep.subr.bf16.mxu0 %v3361_v5  ;;  %v2305_v60 = vld [vmem:[%s4026_s18] ss:$0 sm:$0xff] }
 0x733   :  { %950 = vadd.xlane.f32.xlu1 %v3802_v62 }
 0x734   :  { %2698 = vmatpush3.bf16.msra.mxu0 %v2966_v55  ;;  %v2974_v55 = vld [vmem:[#allocation11 + $0x50] sm:$0xff]  }
 0x735   :  { %2699 = vmatprep.subr.bf16.mxu0 %v3361_v5 }
 0x738   :  { %2700 = vmatpush3.bf16.msra.mxu0 %v2967_v56  ;;  %v2975_v56 = vld [vmem:[#allocation13 + $0x50] sm:$0xff]  }
 0x739   :  { %2701 = vmatprep.subr.bf16.mxu0 %v3361_v5 }
 0x73c   :  { %2702 = vmatpush3.bf16.msra.mxu0 %v2968_v57  ;;  %v2976_v57 = vld [vmem:[#allocation11 + $0x58] sm:$0xff]  }
 0x73d   :  { %2703 = vmatprep.subr.bf16.mxu0 %v3361_v5 }
 0x740   :  { %2704 = vmatpush3.bf16.msra.mxu0 %v2969_v58  ;;  %v2977_v58 = vld [vmem:[#allocation13 + $0x58] sm:$0xff]  }
 0x741   :  { %2729 = vmatprep.subr.bf16.mxu0 %v3361_v5 }
 0x7be   :  { %v949_v14 = vpop.xlane.xlu0 %948 }
 0x7bf   :  { %v952_v0 = vmul.f32 0.03125, %v949_v14 }
 0x7c0   :  { %v951_v16 = vpop.xlane.xlu1 %950 }
 0x7c1   :  { %v954_v18 = vsub.f32 %v3799_v59, %v952_v0  ;;  %v953_v20 = vmul.f32 0.03125, %v951_v16 }
 0x7c3   :  { %v955_v1 = vsub.f32 %v3802_v62, %v953_v20  ;;  %v956_v22 = vmul.f32 %v954_v18, %v3657_v8 }
 0x7c5   :  { %v958_v23 = vmul.f32 %v956_v22, %v956_v22  ;;  %v957_v24 = vmul.f32 %v955_v1, %v3661_v13 }
 0x7c7   :  { %960 = vadd.xlane.f32.xlu0 %v958_v23  ;;  %v959_v25 = vmul.f32 %v957_v24, %v957_v24 }
 0x7c9   :  { %962 = vadd.xlane.f32.xlu1 %v959_v25 }
 0x854   :  { %v961_v32 = vpop.xlane.xlu0 %960 }
 0x855   :  { %v964_v33 = vmul.f32 0.03125, %v961_v32  ;;  %v2316_v32 = vld [vmem:[%s4028_s20] ss:$0 sm:$0xff] }
 0x856   :  { %v963_v34 = vpop.xlane.xlu1 %962 }
 0x857   :  { %v966_v35 = vadd.f32 1e-05, %v964_v33  ;;  %v965_v36 = vmul.f32 0.03125, %v963_v34 }
 0x859   :  { %3030 = vrsqrt.f32 %v966_v35  ;;  %v967_v37 = vadd.f32 1e-05, %v965_v36 }
 0x85b   :  { %3032 = vrsqrt.f32 %v967_v37 }
 0x863   :  { %v3031_v38 = vpop.eup %3030 }
 0x864   :  { %v970_v40 = vmul.f32 %v3031_v38, %v956_v22 }
 0x865   :  { %v3033_v41 = vpop.eup %3032 }
 0x866   :  { %v971_v42 = vmul.f32 %v3033_v41, %v957_v24  ;;  %v978_v43 = vmul.f32 %v2303_v39, %v970_v40  ;;  %v2970_v41 = vld [vmem:[#allocation11 + $0x40] sm:$0xff]  }
 0x868   :  { %v979_v45 = vmul.f32 %v2303_v39, %v971_v42  ;;  %v986_v46 = vadd.f32 %v2304_v44, %v978_v43  ;;  %v2971_v42 = vld [vmem:[#allocation13 + $0x40] sm:$0xff]   ;;  %v2972_v43 = vld [vmem:[#allocation11 + $0x48] sm:$0xff]  }
 0x86a   :  { %v987_v47 = vadd.f32 %v2304_v44, %v979_v45  ;;  %v2973_v44 = vld [vmem:[#allocation13 + $0x48] sm:$0xff]  }
 0x86c   :  { %v988_v48 = vpack.c.bf16 %v987_v47, %v986_v46 }
 0x86e   :  { %2686 = vmatmul.mubr.bf16.vlgmr.msra.gmra.mrb[16].mxu1 %v988_v48 }
 0x86f   :  { %2725 = vmatprep.mubr.msk.bf16.mxu1 %vm3362_vm0, %v3361_v5  ;;  %2710 = vmatpush3.bf16.msra.mxu1 %v2970_v41  ;;  %v2990_v41 = vld [vmem:[#allocation14 + $0x60] sm:$0xff]  }
 0x870   :  { %2711 = vmatprep.subr.bf16.mxu1 %v3361_v5 }
 0x873   :  { %2712 = vmatpush3.bf16.msra.mxu1 %v2972_v43  ;;  %v2992_v43 = vld [vmem:[#allocation14 + $0x70] sm:$0xff]  }
 0x874   :  { %2713 = vmatprep.subr.bf16.mxu1 %v3361_v5 }
 0x877   :  { %2714 = vmatpush3.bf16.msra.mxu1 %v2974_v55 }
 0x878   :  { %2715 = vmatprep.subr.bf16.mxu1 %v3361_v5 }
 0x87b   :  { %2716 = vmatpush3.bf16.msra.mxu1 %v2976_v57 }
 0x87c   :  { %2717 = vmatprep.subr.bf16.mxu1 %v3361_v5 }
 0x941   :  { %v1094_v61 = vpop.f32.mrb[16].mxu1 }
 0x942   :  { %v1095_v6 = vadd.f32 %v2305_v60, %v1094_v61  ;;  %v2687_v11 = vpop.f32.mrb[17].mxu1  ;;  %v2981_v61 = vld [vmem:[#allocation13 + $0x68] sm:$0xff]  }
 0x943   :  { %v1097_v14 = vpop.f32.mrb[18].mxu1  ;;  %v2983_v11 = vld [vmem:[#allocation13 + $0x70] sm:$0xff]  }
 0x944   :  { %v2314_v0 = vmul.f32 -1.702, %v1095_v6  ;;  %v1098_v16 = vadd.f32 %v2305_v60, %v1097_v14  ;;  %v2688_v18 = vpop.f32.mrb[19].mxu1  ;;  %v2980_v60 = vld [vmem:[#allocation11 + $0x68] sm:$0xff]   ;;  %v2984_v14 = vld [vmem:[#allocation11 + $0x78] sm:$0xff]  }
 0x946   :  { %v1105_v20 = vmul.f32 1.442695, %v2314_v0  ;;  %v2315_v1 = vmul.f32 -1.702, %v1098_v16  ;;  %v2985_v0 = vld [vmem:[#allocation13 + $0x78] sm:$0xff]  }
 0x948   :  { %3034 = vpow2.f32 %v1105_v20  ;;  %v1107_v22 = vmul.f32 1.442695, %v2315_v1 }
 0x94a   :  { %3036 = vpow2.f32 %v1107_v22 }
 0x952   :  { %v3035_v23 = vpop.eup %3034 }
 0x953   :  { %v1109_v24 = vadd.f32 1.0, %v3035_v23 }
 0x954   :  { %v3037_v25 = vpop.eup %3036 }
 0x955   :  { %3038 = vrcp.f32 %v1109_v24  ;;  %v1110_v26 = vadd.f32 1.0, %v3037_v25  ;;  %v2327_v25 = vld [vmem:[%s4058_s11 + $0x1] ss:$0 sm:$0xff] }
 0x957   :  { %3040 = vrcp.f32 %v1110_v26 }
 0x95f   :  { %v3039_v27 = vpop.eup %3038 }
 0x960   :  { %v1115_v29 = vmul.f32 %v3039_v27, %v1095_v6  ;;  %v2982_v6 = vld [vmem:[#allocation11 + $0x70] sm:$0xff]  }
 0x961   :  { %v3041_v28 = vpop.eup %3040 }
 0x962   :  { %v1116_v30 = vmul.f32 %v3041_v28, %v1098_v16 }
 0x964   :  { %v1117_v31 = vpack.c.bf16 %v1116_v30, %v1115_v29  ;;  %v2328_v30 = vld [vmem:[%s4014_s6 + $0x1] ss:$0 sm:$0xff] }
 0x966   :  { %2706 = vmatmul.mubr.bf16.vlgmr.msra.gmra.mrb[12].mxu0 %v1117_v31 }
 0x967   :  { %2745 = vmatprep.mubr.msk.bf16.mxu0 %vm3362_vm0, %v3361_v5  ;;  %2730 = vmatpush3.bf16.msra.mxu0 %v2971_v42  ;;  %v2991_v42 = vld [vmem:[#allocation14 + $0x68] sm:$0xff]  }
 0x968   :  { %2731 = vmatprep.subr.bf16.mxu0 %v3361_v5 }
 0x96b   :  { %2732 = vmatpush3.bf16.msra.mxu0 %v2973_v44  ;;  %v2993_v44 = vld [vmem:[#allocation14 + $0x78] sm:$0xff]  }
 0x96c   :  { %2733 = vmatprep.subr.bf16.mxu0 %v3361_v5 }
 0x96f   :  { %2734 = vmatpush3.bf16.msra.mxu0 %v2975_v56 }
 0x970   :  { %2735 = vmatprep.subr.bf16.mxu0 %v3361_v5 }
 0x973   :  { %2736 = vmatpush3.bf16.msra.mxu0 %v2977_v58 }
 0x974   :  { %2737 = vmatprep.subr.bf16.mxu0 %v3361_v5 }
 0xa39   :  { %v1223_v33 = vpop.f32.mrb[12].mxu0 }
 0xa3a   :  { %v1224_v34 = vadd.f32 %v2316_v32, %v1223_v33  ;;  %v2707_v35 = vpop.f32.mrb[13].mxu0 }
 0xa3b   :  { %v1226_v36 = vpop.f32.mrb[14].mxu0 }
 0xa3c   :  { %v3843_v37 = vadd.f32 %v1224_v34, %v3799_v59  ;;  %v1227_v38 = vadd.f32 %v2316_v32, %v1226_v36  ;;  %v2708_v39 = vpop.f32.mrb[15].mxu0  ;;  %v2986_v34 = vld [vmem:[#allocation14 + $0x40] sm:$0xff]   ;;  %v2987_v36 = vld [vmem:[#allocation14 + $0x48] sm:$0xff]  }
 0xa3d   :  { %v2989_v39 = vld [vmem:[#allocation14 + $0x58] sm:$0xff]  }
 0xa3e   :  { %v3846_v40 = vadd.f32 %v1227_v38, %v3802_v62  ;;  %1236 = vadd.xlane.f32.xlu0 %v3843_v37  ;;  %v2988_v38 = vld [vmem:[#allocation14 + $0x50] sm:$0xff]  }
 0xa40   :  { %1238 = vadd.xlane.f32.xlu1 %v3846_v40 }
 0xacb   :  { %v1237_v59 = vpop.xlane.xlu0 %1236 }
 0xacc   :  { %v1240_v62 = vmul.f32 0.03125, %v1237_v59  ;;  %v2340_v59 = vld [vmem:[%s4018_s10 + $0x1] ss:$0 sm:$0xff] }
 0xacd   :  { %v1239_v45 = vpop.xlane.xlu1 %1238 }
 0xace   :  { %v1242_v46 = vsub.f32 %v3843_v37, %v1240_v62  ;;  %v1241_v47 = vmul.f32 0.03125, %v1239_v45 }
 0xad0   :  { %v1243_v48 = vsub.f32 %v3846_v40, %v1241_v47  ;;  %v1244_v49 = vmul.f32 %v1242_v46, %v3657_v8  ;;  %v2978_v8 = vld [vmem:[#allocation11 + $0x60] sm:$0xff]  }
 0xad1   :  { %2718 = vmatpush3.bf16.msra.mxu1 %v2978_v8 }
 0xad2   :  { %v1246_v50 = vmul.f32 %v1244_v49, %v1244_v49  ;;  %v1245_v52 = vmul.f32 %v1243_v48, %v3661_v13  ;;  %v2979_v13 = vld [vmem:[#allocation13 + $0x60] sm:$0xff]   ;;  %2719 = vmatprep.subr.bf16.mxu1 %v3361_v5 }
 0xad3   :  { %2738 = vmatpush3.bf16.msra.mxu0 %v2979_v13 }
 0xad4   :  { %1248 = vadd.xlane.f32.xlu0 %v1246_v50  ;;  %v1247_v54 = vmul.f32 %v1245_v52, %v1245_v52  ;;  %2739 = vmatprep.subr.bf16.mxu0 %v3361_v5 }
 0xad5   :  { %2720 = vmatpush3.bf16.msra.mxu1 %v2980_v60 }
 0xad6   :  { %1250 = vadd.xlane.f32.xlu1 %v1247_v54  ;;  %2721 = vmatprep.subr.bf16.mxu1 %v3361_v5 }
 0xad7   :  { %2740 = vmatpush3.bf16.msra.mxu0 %v2981_v61 }
 0xad8   :  { %2741 = vmatprep.subr.bf16.mxu0 %v3361_v5 }
 0xad9   :  { %2722 = vmatpush3.bf16.msra.mxu1 %v2982_v6 }
 0xada   :  { %2723 = vmatprep.subr.bf16.mxu1 %v3361_v5 }
 0xadb   :  { %2742 = vmatpush3.bf16.msra.mxu0 %v2983_v11 }
 0xadc   :  { %2743 = vmatprep.subr.bf16.mxu0 %v3361_v5 }
 0xadd   :  { %2724 = vmatpush3.bf16.msra.mxu1 %v2984_v14 }
 0xade   :  { %2749 = vmatprep.subr.bf16.mxu1 %v3361_v5 }
 0xadf   :  { %2744 = vmatpush3.bf16.msra.mxu0 %v2985_v0 }
 0xae0   :  { %2769 = vmatprep.subr.bf16.mxu0 %v3361_v5 }
 0xb61   :  { %v1249_v16 = vpop.xlane.xlu0 %1248 }
 0xb62   :  { %v1252_v18 = vmul.f32 0.03125, %v1249_v16 }
 0xb63   :  { %v1251_v20 = vpop.xlane.xlu1 %1250 }
 0xb64   :  { %v1254_v1 = vadd.f32 1e-05, %v1252_v18  ;;  %v1253_v22 = vmul.f32 0.03125, %v1251_v20  ;;  %v2350_v18 = vld [vmem:[%s4020_s12 + $0x1] ss:$0 sm:$0xff] }
 0xb66   :  { %3042 = vrsqrt.f32 %v1254_v1  ;;  %v1255_v23 = vadd.f32 1e-05, %v1253_v22 }
 0xb68   :  { %3044 = vrsqrt.f32 %v1255_v23 }
 0xb70   :  { %v3043_v24 = vpop.eup %3042 }
 0xb71   :  { %v1258_v26 = vmul.f32 %v3043_v24, %v1244_v49 }
 0xb72   :  { %v3045_v27 = vpop.eup %3044 }
 0xb73   :  { %v1259_v28 = vmul.f32 %v3045_v27, %v1245_v52  ;;  %v1266_v29 = vmul.f32 %v2327_v25, %v1258_v26 }
 0xb75   :  { %v1267_v31 = vmul.f32 %v2327_v25, %v1259_v28  ;;  %v1274_v32 = vadd.f32 %v2328_v30, %v1266_v29 }
 0xb77   :  { %v1275_v33 = vadd.f32 %v2328_v30, %v1267_v31 }
 0xb79   :  { %v1276_v35 = vpack.c.bf16 %v1275_v33, %v1274_v32 }
 0xb7b   :  { %2726 = vmatmul.mubr.bf16.vlgmr.msra.gmra.mrb[20].mxu1 %v1276_v35  ;;  %2746 = vmatmul.mubr.bf16.vlgmr.msra.gmra.mrb[16].mxu0 %v1276_v35 }
 0xb7c   :  { %2750 = vmatpush3.bf16.msra.mxu1 %v2986_v34  ;;  %2765 = vmatprep.mubr.msk.bf16.mxu1 %vm3362_vm0, %v3361_v5 }
 0xb7d   :  { %2751 = vmatprep.subr.bf16.mxu1 %v3361_v5  ;;  %2777 = vmatprep.mubr.msk.bf16.mxu0 %vm3362_vm0, %v3361_v5 }
 0xb80   :  { %2752 = vmatpush3.bf16.msra.mxu1 %v2987_v36 }
 0xb81   :  { %2753 = vmatprep.subr.bf16.mxu1 %v3361_v5 }
 0xb84   :  { %2754 = vmatpush3.bf16.msra.mxu1 %v2988_v38 }
 0xb85   :  { %2755 = vmatprep.subr.bf16.mxu1 %v3361_v5 }
 0xb88   :  { %2756 = vmatpush3.bf16.msra.mxu1 %v2989_v39 }
 0xb89   :  { %2757 = vmatprep.subr.bf16.mxu1 %v3361_v5 }
 0xb8c   :  { %2758 = vmatpush3.bf16.msra.mxu1 %v2990_v41 }
 0xb8d   :  { %2759 = vmatprep.subr.bf16.mxu1 %v3361_v5 }
 0xb90   :  { %2760 = vmatpush3.bf16.msra.mxu1 %v2991_v42 }
 0xb91   :  { %2761 = vmatprep.subr.bf16.mxu1 %v3361_v5 }
 0xb94   :  { %2762 = vmatpush3.bf16.msra.mxu1 %v2992_v43 }
 0xb95   :  { %2763 = vmatprep.subr.bf16.mxu1 %v3361_v5 }
 0xb98   :  { %2764 = vmatpush3.bf16.msra.mxu1 %v2993_v44 }
 0xb99   :  { %2889 = vmatprep.subr.bf16.mxu1 %v3757_v4 }
 0xb9b   :  { %2766 = vmatmul.mubr.bf16.vlgmr.msra.gmra.mrb[24].mxu1 %v1276_v35 }
 0xb9c   :  { %2891 = vmatpush3.bf16.msra.mxu1 %v3757_v4 }
 0xb9d   :  { %2893 = vmatprep.subr.bf16.mxu1 %v3761_v12 }
 0xba0   :  { %2895 = vmatpush3.bf16.msra.mxu1 %v3761_v12  ;;  %v2330_v12 = vld [vmem:[%s4016_s8 + $0x1] ss:$0 sm:$0xff] }
 0xba1   :  { %2897 = vmatprep.subr.bf16.mxu1 %v3765_v19 }
 0xba4   :  { %2899 = vmatpush3.bf16.msra.mxu1 %v3765_v19 }
 0xba5   :  { %2901 = vmatprep.subr.bf16.mxu1 %v3767_v21 }
 0xba8   :  { %2903 = vmatpush3.bf16.msra.mxu1 %v3767_v21 }
 0xba9   :  { %2800 = vmatprep.subr.bf16.mxu1 %v3361_v5 }
 0xc4e   :  { %v1384_v62 = vpop.f32.mrb[20].mxu1  ;;  %v1498_v4 = vpop.f32.mrb[16].mxu0 }
 0xc4f   :  { %v1499_v45 = vadd.f32 %v2340_v59, %v1498_v4  ;;  %v2727_v46 = vpop.f32.mrb[21].mxu1  ;;  %v2747_v47 = vpop.f32.mrb[17].mxu0  ;;  %v1385_v21 = vadd.f32 %v2330_v12, %v1384_v62  ;;  %v2995_v4 = vld [vmem:[#allocation16 + $0x48] sm:$0xff]  }
 0xc50   :  { %v1387_v19 = vpop.f32.mrb[22].mxu1  ;;  %v1501_v48 = vpop.f32.mrb[18].mxu0  ;;  %v2998_v46 = vld [vmem:[#allocation16 + $0x60] sm:$0xff]   ;;  %v2999_v47 = vld [vmem:[#allocation16 + $0x68] sm:$0xff]  }
 0xc51   :  { %v2728_v49 = vpop.f32.mrb[23].mxu1  ;;  %v2748_v50 = vpop.f32.mrb[19].mxu0  ;;  %v1388_v52 = vadd.f32 %v2330_v12, %v1387_v19  ;;  %v1502_v54 = vadd.f32 %v2340_v59, %v1501_v48  ;;  %v1619_v55 = vmul.f32 %v1499_v45, %v3708_v63  ;;  %v1621_v56 = vmul.f32 %v1499_v45, %v3710_v2  ;;  %v2996_v12 = vld [vmem:[#allocation16 + $0x50] sm:$0xff]  }
 0xc52   :  { %v1623_v57 = vmul.f32 %v1499_v45, %v3712_v3  ;;  %v1625_v61 = vmul.f32 %v1499_v45, %v3720_v15  ;;  %v2997_v45 = vld [vmem:[#allocation16 + $0x58] sm:$0xff]   ;;  %v3000_v19 = vld [vmem:[#allocation16 + $0x70] sm:$0xff]  }
 0xc53   :  { %v1643_v58 = vpack.c.bf16 %v1388_v52, %v1385_v21  ;;  %v1620_v8 = vmul.f32 %v1502_v54, %v3714_v7  ;;  %v1622_v13 = vmul.f32 %v1502_v54, %v3716_v9  ;;  %v1624_v60 = vmul.f32 %v1502_v54, %v3718_v10 }
 0xc54   :  { %v1626_v6 = vmul.f32 %v1502_v54, %v3722_v17 }
 0xc55   :  { %v1627_v11 = vpack.c.bf16 %v1620_v8, %v1619_v55  ;;  %v1628_v14 = vpack.c.bf16 %v1622_v13, %v1621_v56  ;;  %v1629_v0 = vpack.c.bf16 %v1624_v60, %v1623_v57 }
 0xc56   :  { %v1630_v16 = vpack.c.bf16 %v1626_v6, %v1625_v61 }
 0xc57   :  { %2770 = vmatpush3.bf16.xpose.msra.mxu0 %v1627_v11  ;;  %v2363_v11 = vld [vmem:[%s4022_s14 + $0x1] ss:$0 sm:$0xff] }
 0xc58   :  { %2771 = vmatprep.subr.bf16.mxu0 %v3361_v5 }
 0xc5f   :  { %2772 = vmatpush3.bf16.xpose.msra.mxu0 %v1628_v14 }
 0xc60   :  { %2773 = vmatprep.subr.bf16.mxu0 %v3361_v5 }
 0xc67   :  { %2774 = vmatpush3.bf16.xpose.msra.mxu0 %v1629_v0 }
 0xc68   :  { %2775 = vmatprep.subr.bf16.mxu0 %v3361_v5 }
 0xc6e   :  { %v1612_v20 = vpop.f32.mrb[24].mxu1 }
 0xc6f   :  { %v1613_v1 = vadd.f32 %v2350_v18, %v1612_v20  ;;  %v2767_v22 = vpop.f32.mrb[25].mxu1  ;;  %2776 = vmatpush3.bf16.xpose.msra.mxu0 %v1630_v16 }
 0xc70   :  { %v1615_v23 = vpop.f32.mrb[26].mxu1  ;;  %2812 = vmatprep.subr.bf16.mxu0 %v3361_v5 }
 0xc71   :  { %v2768_v24 = vpop.f32.mrb[27].mxu1  ;;  %v1616_v25 = vadd.f32 %v2350_v18, %v1615_v23  ;;  %v1631_v26 = vmul.f32 %v1613_v1, %v3708_v63  ;;  %v1633_v27 = vmul.f32 %v1613_v1, %v3710_v2  ;;  %v1635_v28 = vmul.f32 %v1613_v1, %v3712_v3 }
 0xc72   :  { %v1637_v29 = vmul.f32 %v1613_v1, %v3720_v15  ;;  %v3002_v24 = vld [vmem:[#allocation17 + $0x40] sm:$0xff]  }
 0xc73   :  { %v1632_v30 = vmul.f32 %v1616_v25, %v3714_v7  ;;  %v1634_v31 = vmul.f32 %v1616_v25, %v3716_v9  ;;  %v1636_v32 = vmul.f32 %v1616_v25, %v3718_v10  ;;  %v1638_v33 = vmul.f32 %v1616_v25, %v3722_v17  ;;  %v3003_v25 = vld [vmem:[#allocation17 + $0x48] sm:$0xff]  }
 0xc75   :  { %v1639_v34 = vpack.c.bf16 %v1632_v30, %v1631_v26  ;;  %v1640_v35 = vpack.c.bf16 %v1634_v31, %v1633_v27  ;;  %v1641_v36 = vpack.c.bf16 %v1636_v32, %v1635_v28  ;;  %v1642_v38 = vpack.c.bf16 %v1638_v33, %v1637_v29  ;;  %v3066_v30 = vld [vmem:[#allocation5] sm:$0xff]  ;;  %v3067_v33 = vld [vmem:[#allocation5 + $0x8] sm:$0xff] }
 0xc76   :  { %2778 = vmatmul.mubr.bf16.vlgmr.msra.gmra.mrb[20].mxu0 %v1643_v58  ;;  %v3001_v58 = vld [vmem:[#allocation16 + $0x78] sm:$0xff]  }
 0xc77   :  { %2828 = vmatprep.mubr.msk.bf16.mxu0 %vm3362_vm0, %v3361_v5 }
 0xd49   :  { %v1678_v63 = vpop.f32.mrb[20].mxu0 }
 0xd4a   :  { %v1679_v2 = vadd.f32 %v1678_v63, %v3749_v51  ;;  %v2779_v3 = vpop.f32.mrb[21].mxu0  ;;  %v3006_v63 = vld [vmem:[#allocation17 + $0x60] sm:$0xff]  }
 0xd4b   :  { %v1681_v15 = vpop.f32.mrb[22].mxu0  ;;  %v3008_v3 = vld [vmem:[#allocation17 + $0x70] sm:$0xff]  }
 0xd4c   :  { %v1682_v7 = vadd.f32 %v1681_v15, %v3751_v53  ;;  %v2780_v9 = vpop.f32.mrb[23].mxu0  ;;  %v1685_v10 = vsel %vm686_vm1, %v1679_v2, -inf  ;;  %v2994_v53 = vld [vmem:[#allocation16 + $0x40] sm:$0xff]   ;;  %v3009_v15 = vld [vmem:[#allocation17 + $0x78] sm:$0xff]  }
 0xd4d   :  { %1686 = vmax.xlane.f32.xlu0 %v1685_v10  ;;  %2813 = vmatpush3.bf16.msra.mxu0 %v2994_v53  ;;  %v2375_v53 = vld [vmem:[%s4024_s16 + $0x1] ss:$0 sm:$0xff] }
 0xd4e   :  { %v1688_v17 = vsel %vm686_vm1, %v1682_v7, -inf  ;;  %2814 = vmatprep.subr.bf16.mxu0 %v3361_v5 }
 0xd4f   :  { %1689 = vmax.xlane.f32.xlu1 %v1688_v17 }
 0xd51   :  { %2815 = vmatpush3.bf16.msra.mxu0 %v2995_v4 }
 0xd52   :  { %2816 = vmatprep.subr.bf16.mxu0 %v3361_v5 }
 0xd55   :  { %2817 = vmatpush3.bf16.msra.mxu0 %v2996_v12 }
 0xd56   :  { %2818 = vmatprep.subr.bf16.mxu0 %v3361_v5 }
 0xd59   :  { %2819 = vmatpush3.bf16.msra.mxu0 %v2997_v45 }
 0xd5a   :  { %2820 = vmatprep.subr.bf16.mxu0 %v3361_v5 }
 0xd5d   :  { %2821 = vmatpush3.bf16.msra.mxu0 %v2998_v46 }
 0xd5e   :  { %2822 = vmatprep.subr.bf16.mxu0 %v3361_v5 }
 0xd61   :  { %2823 = vmatpush3.bf16.msra.mxu0 %v2999_v47  ;;  %v3010_v47 = vld [vmem:[#allocation19 + $0x40] sm:$0xff]  }
 0xd62   :  { %2824 = vmatprep.subr.bf16.mxu0 %v3361_v5 }
 0xd65   :  { %2825 = vmatpush3.bf16.msra.mxu0 %v3000_v19  ;;  %v3011_v19 = vld [vmem:[#allocation19 + $0x48] sm:$0xff]  }
 0xd66   :  { %2826 = vmatprep.subr.bf16.mxu0 %v3361_v5 }
 0xd69   :  { %2827 = vmatpush3.bf16.msra.mxu0 %v3001_v58 }
 0xd6a   :  { %2852 = vmatprep.subr.bf16.mxu0 %v3361_v5 }
 0xdda   :  { %v1687_v39 = vpop.xlane.xlu0 %1686 }
 0xddb   :  { %v1691_v41 = vsub.f32 %v1679_v2, %v1687_v39  ;;  %v3007_v2 = vld [vmem:[#allocation17 + $0x68] sm:$0xff]  }
 0xddc   :  { %v1690_v42 = vpop.xlane.xlu1 %1689 }
 0xddd   :  { %v1693_v43 = vmul.f32 1.442695, %v1691_v41  ;;  %v1692_v44 = vsub.f32 %v1682_v7, %v1690_v42 }
 0xddf   :  { %3046 = vpow2.f32 %v1693_v43  ;;  %v1695_v59 = vmul.f32 1.442695, %v1692_v44  ;;  %v2374_v43 = vld [vmem:[%s4023_s15 + $0x1] ss:$0 sm:$0xff] }
 0xde1   :  { %3048 = vpow2.f32 %v1695_v59 }
 0xde9   :  { %v3047_v51 = vpop.eup %3046 }
 0xdea   :  { %2797 = vmatprep.mubr.msk.f32.mxu1 %vm686_vm1, %v3047_v51 }
 0xdeb   :  { %v3049_v62 = vpop.eup %3048 }
 0xdec   :  { %2798 = vmatmul.mubr.msk.f32.vlgmr.msra.gmra.mrb[10].mxu1 %vm686_vm1, %v3049_v62 }
 0xded   :  { %2801 = vmatpush3.bf16.msra.mxu1 %v1639_v34  ;;  %2808 = vmatprep.mubr.msk.bf16.mxu1 %vm3362_vm0, %v3361_v5 }
 0xdee   :  { %2802 = vmatprep.subr.bf16.mxu1 %v3361_v5 }
 0xdf1   :  { %2803 = vmatpush3.bf16.msra.mxu1 %v1640_v35 }
 0xdf2   :  { %2804 = vmatprep.subr.bf16.mxu1 %v3361_v5 }
 0xdf5   :  { %2805 = vmatpush3.bf16.msra.mxu1 %v1641_v36  ;;  %v3004_v36 = vld [vmem:[#allocation17 + $0x50] sm:$0xff]  }
 0xdf6   :  { %2806 = vmatprep.subr.bf16.mxu1 %v3361_v5 }
 0xdf9   :  { %2807 = vmatpush3.bf16.msra.mxu1 %v1642_v38  ;;  %v3005_v38 = vld [vmem:[#allocation17 + $0x58] sm:$0xff]  }
 0xdfa   :  { %2832 = vmatprep.subr.bf16.mxu1 %v3361_v5 }
 0xebf   :  { %v2799_v48 = vpop.f32.mrb[10].mxu1 }
 0xec0   :  { %v1779_v49 = vmax.f32 %v2799_v48, 1e-30  ;;  %v1769_v50 = vpop.f32.mrb[11].mxu1  ;;  %v3012_v48 = vld [vmem:[#allocation19 + $0x50] sm:$0xff]  }
 0xec1   :  { %v1778_v21 = vmax.f32 %v1769_v50, 1e-30  ;;  %v3014_v50 = vld [vmem:[#allocation19 + $0x60] sm:$0xff]  }
 0xec2   :  { %3050 = vrcp.f32 %v1779_v49  ;;  %v3013_v49 = vld [vmem:[#allocation19 + $0x58] sm:$0xff]  }
 0xec3   :  { %3052 = vrcp.f32 %v1778_v21  ;;  %v3015_v21 = vld [vmem:[#allocation19 + $0x68] sm:$0xff]  }
 0xecc   :  { %v3051_v52 = vpop.eup %3050 }
 0xecd   :  { %v3053_v54 = vpop.eup %3052  ;;  %v1783_v55 = vmul.f32 %v3051_v52, %v3049_v62  ;;  %v3016_v52 = vld [vmem:[#allocation19 + $0x70] sm:$0xff]  }
 0xece   :  { %v1782_v56 = vmul.f32 %v3053_v54, %v3047_v51  ;;  %v3017_v54 = vld [vmem:[#allocation19 + $0x78] sm:$0xff]  }
 0xed0   :  { %v1784_v57 = vpack.c.bf16 %v1783_v55, %v1782_v56  ;;  %v2377_v55 = vld [vmem:[%s4026_s18 + $0x1] ss:$0 sm:$0xff] }
 0xed2   :  { %2809 = vmatmul.mubr.msk.bf16.vlgmr.msra.gmra.mrb[28].mxu1 %vm686_vm1, %v1784_v57 }
 0xed3   :  { %2848 = vmatprep.mubr.msk.bf16.mxu1 %vm3362_vm0, %v3361_v5  ;;  %2833 = vmatpush3.bf16.msra.mxu1 %v3002_v24 }
 0xed4   :  { %2834 = vmatprep.subr.bf16.mxu1 %v3361_v5 }
 0xed7   :  { %2835 = vmatpush3.bf16.msra.mxu1 %v3003_v25 }
 0xed8   :  { %2836 = vmatprep.subr.bf16.mxu1 %v3361_v5 }
 0xedb   :  { %2837 = vmatpush3.bf16.msra.mxu1 %v3004_v36 }
 0xedc   :  { %2838 = vmatprep.subr.bf16.mxu1 %v3361_v5 }
 0xedf   :  { %2839 = vmatpush3.bf16.msra.mxu1 %v3005_v38 }
 0xee0   :  { %2840 = vmatprep.subr.bf16.mxu1 %v3361_v5 }
 0xee3   :  { %2841 = vmatpush3.bf16.msra.mxu1 %v3006_v63 }
 0xee4   :  { %2842 = vmatprep.subr.bf16.mxu1 %v3361_v5 }
 0xee7   :  { %2843 = vmatpush3.bf16.msra.mxu1 %v3007_v2 }
 0xee8   :  { %2844 = vmatprep.subr.bf16.mxu1 %v3361_v5 }
 0xeeb   :  { %2845 = vmatpush3.bf16.msra.mxu1 %v3008_v3 }
 0xeec   :  { %2846 = vmatprep.subr.bf16.mxu1 %v3361_v5 }
 0xeef   :  { %2847 = vmatpush3.bf16.msra.mxu1 %v3009_v15 }
 0xfa5   :  { %v1822_v8 = vpop.f32.mrb[28].mxu1 }
 0xfa6   :  { %v2810_v13 = vpop.f32.mrb[29].mxu1 }
 0xfa7   :  { %v1825_v60 = vpop.f32.mrb[30].mxu1 }
 0xfa8   :  { %v1829_v61 = vpack.c.bf16 %v1825_v60, %v1822_v8  ;;  %v2811_v6 = vpop.f32.mrb[31].mxu1 }
 0xfaa   :  { %2829 = vmatmul.mubr.bf16.vlgmr.msra.gmra.mrb[24].mxu0 %v1829_v61 }
 0xfab   :  { %2868 = vmatprep.mubr.msk.bf16.mxu0 %vm3362_vm0, %v3361_v5  ;;  %2853 = vmatpush3.bf16.msra.mxu0 %v3010_v47 }
 0xfac   :  { %2854 = vmatprep.subr.bf16.mxu0 %v3361_v5 }
 0xfaf   :  { %2855 = vmatpush3.bf16.msra.mxu0 %v3011_v19 }
 0xfb0   :  { %2856 = vmatprep.subr.bf16.mxu0 %v3361_v5 }
 0xfb3   :  { %2857 = vmatpush3.bf16.msra.mxu0 %v3012_v48 }
 0xfb4   :  { %2858 = vmatprep.subr.bf16.mxu0 %v3361_v5 }
 0xfb7   :  { %2859 = vmatpush3.bf16.msra.mxu0 %v3013_v49 }
 0xfb8   :  { %2860 = vmatprep.subr.bf16.mxu0 %v3361_v5 }
 0xfbb   :  { %2861 = vmatpush3.bf16.msra.mxu0 %v3014_v50 }
 0xfbc   :  { %2862 = vmatprep.subr.bf16.mxu0 %v3361_v5 }
 0xfbf   :  { %2863 = vmatpush3.bf16.msra.mxu0 %v3015_v21 }
 0xfc0   :  { %2864 = vmatprep.subr.bf16.mxu0 %v3361_v5 }
 0xfc3   :  { %2865 = vmatpush3.bf16.msra.mxu0 %v3016_v52 }
 0xfc4   :  { %2866 = vmatprep.subr.bf16.mxu0 %v3361_v5 }
 0xfc7   :  { %2867 = vmatpush3.bf16.msra.mxu0 %v3017_v54 }
0x107d   :  { %v1937_v14 = vpop.f32.mrb[24].mxu0 }
0x107e   :  { %v1938_v0 = vadd.f32 %v2363_v11, %v1937_v14  ;;  %v2830_v16 = vpop.f32.mrb[25].mxu0 }
0x107f   :  { %v1940_v18 = vpop.f32.mrb[26].mxu0 }
0x1080   :  { %v3956_v20 = vadd.f32 %v1938_v0, %v3843_v37  ;;  %v1941_v1 = vadd.f32 %v2363_v11, %v1940_v18  ;;  %v2831_v22 = vpop.f32.mrb[27].mxu0 }
0x1082   :  { %v3959_v23 = vadd.f32 %v1941_v1, %v3846_v40  ;;  %1950 = vadd.xlane.f32.xlu0 %v3956_v20 }
0x1084   :  { %1952 = vadd.xlane.f32.xlu1 %v3959_v23 }
0x110f   :  { %v1951_v26 = vpop.xlane.xlu0 %1950 }
0x1110   :  { %v1954_v37 = vmul.f32 0.03125, %v1951_v26 }
0x1111   :  { %v1953_v27 = vpop.xlane.xlu1 %1952 }
0x1112   :  { %v1956_v28 = vsub.f32 %v3956_v20, %v1954_v37  ;;  %v1955_v29 = vmul.f32 0.03125, %v1953_v27  ;;  %v2389_v37 = vld [vmem:[%s4028_s20 + $0x1] ss:$0 sm:$0xff] }
0x1114   :  { %v1957_v40 = vsub.f32 %v3959_v23, %v1955_v29  ;;  %v1958_v31 = vmul.f32 %v3066_v30, %v1956_v28 }
0x1116   :  { %v1960_v32 = vmul.f32 %v1958_v31, %v1958_v31  ;;  %v1959_v34 = vmul.f32 %v3067_v33, %v1957_v40 }
0x1118   :  { %1962 = vadd.xlane.f32.xlu0 %v1960_v32  ;;  %v1961_v35 = vmul.f32 %v1959_v34, %v1959_v34 }
0x111a   :  { %1964 = vadd.xlane.f32.xlu1 %v1961_v35 }
0x11a5   :  { %v1963_v7 = vpop.xlane.xlu0 %1962 }
0x11a6   :  { %v1966_v9 = vmul.f32 0.03125, %v1963_v7 }
0x11a7   :  { %v1965_v10 = vpop.xlane.xlu1 %1964 }
0x11a8   :  { %v1968_v17 = vadd.f32 1e-05, %v1966_v9  ;;  %v1967_v39 = vmul.f32 0.03125, %v1965_v10 }
0x11aa   :  { %3054 = vrsqrt.f32 %v1968_v17  ;;  %v1969_v41 = vadd.f32 1e-05, %v1967_v39 }
0x11ac   :  { %3056 = vrsqrt.f32 %v1969_v41 }
0x11b4   :  { %v3055_v42 = vpop.eup %3054 }
0x11b5   :  { %v1972_v44 = vmul.f32 %v3055_v42, %v1958_v31 }
0x11b6   :  { %v3057_v59 = vpop.eup %3056 }
0x11b7   :  { %v1973_v51 = vmul.f32 %v3057_v59, %v1959_v34  ;;  %v1980_v62 = vmul.f32 %v2374_v43, %v1972_v44 }
0x11b9   :  { %v1981_v4 = vmul.f32 %v2374_v43, %v1973_v51  ;;  %v1988_v12 = vadd.f32 %v2375_v53, %v1980_v62 }
0x11bb   :  { %v1989_v45 = vadd.f32 %v2375_v53, %v1981_v4 }
0x11bd   :  { %v1990_v46 = vpack.c.bf16 %v1989_v45, %v1988_v12 }
0x11bf   :  { %2849 = vmatmul.mubr.bf16.vlgmr.msra.gmra.mrb[32].mxu1 %v1990_v46 }
0x1292   :  { %v2098_v56 = vpop.f32.mrb[32].mxu1 }
0x1293   :  { %v2099_v57 = vadd.f32 %v2377_v55, %v2098_v56  ;;  %v2850_v58 = vpop.f32.mrb[33].mxu1 }
0x1294   :  { %v2101_v8 = vpop.f32.mrb[34].mxu1 }
0x1295   :  { %v2386_v13 = vmul.f32 -1.702, %v2099_v57  ;;  %v2102_v60 = vadd.f32 %v2377_v55, %v2101_v8  ;;  %v2851_v61 = vpop.f32.mrb[35].mxu1 }
0x1297   :  { %v2109_v6 = vmul.f32 1.442695, %v2386_v13  ;;  %v2387_v11 = vmul.f32 -1.702, %v2102_v60 }
0x1299   :  { %3058 = vpow2.f32 %v2109_v6  ;;  %v2111_v14 = vmul.f32 1.442695, %v2387_v11 }
0x129b   :  { %3060 = vpow2.f32 %v2111_v14 }
0x12a3   :  { %v3059_v0 = vpop.eup %3058 }
0x12a4   :  { %v2113_v5 = vadd.f32 1.0, %v3059_v0 }
0x12a5   :  { %v3061_v16 = vpop.eup %3060 }
0x12a6   :  { %3062 = vrcp.f32 %v2113_v5  ;;  %v2114_v18 = vadd.f32 1.0, %v3061_v16 }
0x12a8   :  { %3064 = vrcp.f32 %v2114_v18 }
0x12b0   :  { %v3063_v1 = vpop.eup %3062 }
0x12b1   :  { %v2119_v24 = vmul.f32 %v3063_v1, %v2099_v57 }
0x12b2   :  { %v3065_v22 = vpop.eup %3064 }
0x12b3   :  { %v2120_v25 = vmul.f32 %v3065_v22, %v2102_v60 }
0x12b5   :  { %v2121_v26 = vpack.c.bf16 %v2120_v25, %v2119_v24 }
0x12b7   :  { %2869 = vmatmul.mubr.bf16.vlgmr.msra.gmra.mrb[28].mxu0 %v2121_v26 }
0x138a   :  { %v2229_v27 = vpop.f32.mrb[28].mxu0 }
0x138b   :  { %v2230_v28 = vadd.f32 %v2389_v37, %v2229_v27  ;;  %v2870_v29 = vpop.f32.mrb[29].mxu0 }
0x138c   :  { %v2232_v40 = vpop.f32.mrb[30].mxu0 }
0x138d   :  { %v2236_v30 = vadd.f32 %v2230_v28, %v3956_v20  ;;  %v2233_v31 = vadd.f32 %v2389_v37, %v2232_v40  ;;  %v2871_v32 = vpop.f32.mrb[31].mxu0 }
0x138f   :  { %2238 = vst [vmem:[#allocation20] sm:$0xff] %v2236_v30  ;;  %v2237_v33 = vadd.f32 %v2233_v31, %v3959_v23 }
0x1391   :  { %2239 = vst [vmem:[#allocation20 + $0x8] sm:$0xff] %v2237_v33 }
0x1392   :  { %3321 = shalt.err (!%p3318_p8)
}
0x1393   :  { %s4059_s3 = sld [smem:[#allocation34_spill]] }
0x1399   :  { %s3322_s13 = scalar_lea.hbm %s4059_s3, 256 }
0x139a   :  { %p3323_p9 = scmp.ne.s32.totalorder %s4059_s3, %s3322_s13  ;;  %p3326_p10 = scmp.lt.u32.totalorder %s3322_s13, %s4059_s3 }
0x139c   :  { %p3328_p11 = pnand %p3326_p10, %p3323_p9 }
0x139e   :  { %3331 = shalt.err (!%p3328_p11)
}
0x139f   :  { %2251 = dma.vmem_to_hbm [thread:$0]  %s2246_s1, 256, %s4059_s3, [#allocation4], %s4054_s5, %s4054_s5, %s4053_s4  }
0x13a0   :  { %3344 = dma.done.wait [#allocation4], 256  }
0x13a1   :  { %3345 = vsyncadd [#allocation4], 4294967040 }
0x13a2   :  { %2255 = vsyncpa [#allocation3], 1 }
0x13a3   :  { %2256 = vsyncpa [#allocation6], 1 }
0x13a4   :  { %2257 = vsyncpa [#allocation9], 1 }
0x13a5   :  { %2258 = vsyncpa [#allocation12], 1 }
0x13a6   :  { %2259 = vsyncpa [#allocation15], 1 }
0x13a7   :  { %2260 = vsyncpa [#allocation18], 1 }
0x13a8   :  { %2261 = vsyncpa [#allocation4], 1 }

</bundles_post_ra>
